<compile_context>
chip_gen: v6e
topology: v6e:2x2x1
jax: 0.10.0
libtpu: 0.0.40
codegen_flags: <defaults>
</compile_context>

<pallas_src>
import functools

import jax
import jax.numpy as jnp
import numpy as np
from jax.experimental import pallas as pl
from jax.experimental.pallas import tpu as pltpu

NEG_SLOPE = 0.01   # nn.LeakyReLU() default negative_slope
KERNEL_K = 3       # conv kernel size
DILATION = 2
PADDING = 2        # => output length == input length
LPAD = 8           # left margin (>= PADDING, multiple of 8 so the interior
                   # writeback store stays sublane-aligned)


def _round_up(x, m):
    return (x + m - 1) // m * m


def _fused_convlm_kernel(widx_ref, emb_ref, w_ref, b_ref, o_ref, xpad_ref, *,
                         B, L, K, DIL, PAD, NL, C, LWIN):
    """Embedding gather + 6x (dilated Conv1d + LeakyReLU), activation in VMEM.

    widx_ref : (L*B,) int32 SMEM    flattened word indices (l-major)
    emb_ref  : (vocab, C) VMEM      channel-padded embedding table
    w_ref    : (NL, C, K*C) VMEM    per-layer packed weights, cols [j*C:(j+1)*C] = W[:,:,j].T
    b_ref    : (NL, 1, C) VMEM      per-layer bias
    o_ref    : (B, L, C)            last layer activation (channels-last)
    xpad_ref : (B, SW, C) scratch   zero margins implement the conv zero-padding
    """
    SW = xpad_ref.shape[1]

    # --- Prologue: zero ONLY the margins; interior is overwritten below. -----
    xpad_ref[:, 0:LPAD, :] = jnp.zeros((B, LPAD, C), jnp.float32)
    rpad = SW - (LPAD + L)
    xpad_ref[:, LPAD + L:SW, :] = jnp.zeros((B, rpad, C), jnp.float32)

    # --- In-kernel embedding gather (does the (L,B) -> (B,L) reorder too). ---
    # Bit-exact row copies from the VMEM table (no one-hot matmul), indices read
    # as scalars from SMEM.
    for b in range(B):
        for l in range(L):
            idx = widx_ref[l * B + b]
            xpad_ref[b, LPAD + l:LPAD + l + 1, :] = emb_ref[pl.ds(idx, 1), :]

    # --- 6 fused conv layers: one wide MXU matmul per layer + shifted adds. --
    # Window row s corresponds to input position (s - PAD); margins are zero, so
    # out-of-range taps contribute exactly 0 without any masking.
    WSTART = LPAD - PAD                       # static, e.g. 6
    for layer in range(NL):                   # static unroll over the 6 layers
        xw = xpad_ref[:, WSTART:WSTART + LWIN, :]          # (B, LWIN, C) ref-slice load
        y = jnp.dot(xw.reshape(B * LWIN, C), w_ref[layer],
                    preferred_element_type=jnp.float32)    # (B*LWIN, K*C)
        y = y.reshape(B, LWIN, K * C)
        h = b_ref[layer]                                   # (1, C): bias-initialized acc
        for j in range(K):                                 # output-shifted tap combine
            h = h + y[:, j * DIL:j * DIL + L, j * C:(j + 1) * C]
        h = jnp.where(h >= 0, h, NEG_SLOPE * h)            # LeakyReLU(0.01)
        if layer + 1 < NL:
            xpad_ref[:, LPAD:LPAD + L, :] = h              # aligned interior writeback
        else:
            o_ref[...] = h.astype(o_ref.dtype)             # full-width store, no lane crop


def prepare_params(emb_w, conv_ws, conv_bs):
    """One-time host-side prep: pack parameters into the fused-kernel layout.

    Returns:
      emb_padded : (vocab, Cmax)
      w_stack    : (num_layers, Cmax, K*Cmax)  w_stack[l][:, j*Cmax:j*Cmax+Cout] = W_l[:,:,j].T
      b_stack    : (num_layers, 1, Cmax)
    Zero channel-padding (rows >= Cin, cols >= Cout, padded emb channels) keeps
    the math identical while letting all layers share one stack.
    """
    emb_w = np.asarray(emb_w, np.float32)
    nl = len(conv_ws)
    k = int(np.asarray(conv_ws[0]).shape[2])
    cmax = max([emb_w.shape[1]]
               + [int(np.asarray(w).shape[0]) for w in conv_ws]
               + [int(np.asarray(w).shape[1]) for w in conv_ws])
    w_stack = np.zeros((nl, cmax, k * cmax), np.float32)
    b_stack = np.zeros((nl, 1, cmax), np.float32)
    for i, (w, b) in enumerate(zip(conv_ws, conv_bs)):
        w = np.asarray(w, np.float32)                      # (Cout, Cin, K)
        cout, cin, kk = w.shape
        for j in range(kk):
            w_stack[i, :cin, j * cmax:j * cmax + cout] = w[:, :, j].T
        b_stack[i, 0, :cout] = np.asarray(b, np.float32)
    emb_p = np.zeros((emb_w.shape[0], cmax), np.float32)
    emb_p[:, :emb_w.shape[1]] = emb_w
    return jnp.asarray(emb_p), jnp.asarray(w_stack), jnp.asarray(b_stack)


@functools.partial(jax.jit, static_argnames=("hidden_dim",))
def conv_lm_forward(word_idx, word_len, emb_p, w_stack, b_stack, *, hidden_dim):
    """Pallas implementation of ConvLanguageModel.forward.

    word_idx : (max_word_len, batch) int32
    word_len : (batch,) int32 -- unused (pack_padded_sequence result is discarded
               in the reference code)
    returns  : (batch, hidden_dim, max_word_len) float32  == hs[-1]
    """
    del word_len
    L, B = word_idx.shape
    NL, C, KC = w_stack.shape
    K = KC // C
    assert hidden_dim <= C
    # Matmul window: covers input positions [-PAD, L-1+(K-1)*DIL-PAD], rounded up
    # to a multiple of 8 rows so the (B, LWIN, C) <-> (B*LWIN, C) reshapes are
    # layout-trivial.  Extra rows read the zero margin and contribute nothing.
    LWIN = _round_up(L + (K - 1) * DILATION, 8)
    SW = (LPAD - PADDING) + LWIN                     # scratch length >= LPAD + L + PADDING

    widx_flat = word_idx.reshape(L * B).astype(jnp.int32)
    kernel = functools.partial(
        _fused_convlm_kernel, B=B, L=L, K=K, DIL=DILATION, PAD=PADDING,
        NL=NL, C=C, LWIN=LWIN)
    out_blc = pl.pallas_call(
        kernel,
        out_shape=jax.ShapeDtypeStruct((B, L, C), jnp.float32),
        in_specs=[
            pl.BlockSpec(memory_space=pltpu.MemorySpace.SMEM),   # word indices
            pl.BlockSpec(memory_space=pltpu.MemorySpace.VMEM),   # embedding table
            pl.BlockSpec(memory_space=pltpu.MemorySpace.VMEM),   # packed weights
            pl.BlockSpec(memory_space=pltpu.MemorySpace.VMEM),   # biases
        ],
        out_specs=pl.BlockSpec(memory_space=pltpu.MemorySpace.VMEM),
        scratch_shapes=[pltpu.VMEM((B, SW, C), jnp.float32)],
    )(widx_flat, emb_p, w_stack, b_stack)
    if hidden_dim < C:                                # static; no-op in default config
        out_blc = out_blc[:, :, :hidden_dim]
    return jnp.transpose(out_blc, (0, 2, 1))          # NCL to match PyTorch


def _reference_forward(word_idx, emb_w, conv_ws, conv_bs):
    """Pure-JAX (lax.conv) reference for the same math."""
    x = jnp.take(emb_w, word_idx, axis=0)
    h = jnp.transpose(x, (1, 2, 0))                   # (B, C, L)
    for w, b in zip(conv_ws, conv_bs):
        h = jax.lax.conv_general_dilated(
            h, w, window_strides=(1,), padding=[(PADDING, PADDING)],
            rhs_dilation=(DILATION,),
            dimension_numbers=("NCH", "OIH", "NCH"))
        h = h + b[None, :, None]
        h = jnp.where(h >= 0, h, NEG_SLOPE * h)
    return h


if __name__ == "__main__":
    # Small shapes consistent with the module's forward.
    vocab_size = 50
    emb_dim = 32          # embedding_dim
    hidden_dim = 32
    num_layers = 6        # hard-coded to 6 in __init__
    max_word_len = 16     # sequence length
    batch_size = 2
    pad_idx = 1           # torchtext pad token index

    key = jax.random.PRNGKey(0)
    keys = jax.random.split(key, 2 + 2 * num_layers)

    # Deterministic parameter init (synthetic; not a checkpoint load).
    emb_w = jax.random.normal(keys[0], (vocab_size, emb_dim), jnp.float32) * 0.1
    emb_w = emb_w.at[pad_idx].set(0.0)               # padding_idx row is zero

    in_dims = [emb_dim] + [hidden_dim] * (num_layers - 1)
    conv_ws, conv_bs = [], []
    for i in range(num_layers):
        cin = in_dims[i]
        scale = 1.0 / np.sqrt(cin * KERNEL_K)
        w = jax.random.normal(keys[2 + 2 * i],
                              (hidden_dim, cin, KERNEL_K), jnp.float32) * scale
        b = jax.random.normal(keys[3 + 2 * i], (hidden_dim,), jnp.float32) * scale
        conv_ws.append(w)
        conv_bs.append(b)

    word_idx = jax.random.randint(keys[1], (max_word_len, batch_size),
                                  0, vocab_size, dtype=jnp.int32)
    word_len = jnp.full((batch_size,), max_word_len, jnp.int32)

    # One-time parameter preparation (hoisted out of the forward path).
    emb_p, w_stack, b_stack = prepare_params(emb_w, conv_ws, conv_bs)

    out = conv_lm_forward(word_idx, word_len, emb_p, w_stack, b_stack,
                          hidden_dim=hidden_dim)
    out = jax.block_until_ready(out)
    assert out.shape == (batch_size, hidden_dim, max_word_len), out.shape

    ref = _reference_forward(word_idx, emb_w, conv_ws, conv_bs)
    np.testing.assert_allclose(np.asarray(out), np.asarray(ref),
                               rtol=1e-4, atol=1e-4)

    # TODO(synk): char_cnn / char_field paths are unimplemented in the original
    # module as well (passed but never used), so they are omitted here.
    print("KERNEL_OK")
</pallas_src>

<mosaic_0001>
module attributes {stable_mosaic.version = 11 : i64} {
  func.func @_fused_convlm_kernel(%arg0: memref<32xi32, #tpu.memory_space<smem>>, %arg1: memref<50x32xf32, #tpu.memory_space<vmem>>, %arg2: memref<6x32x96xf32, #tpu.memory_space<vmem>>, %arg3: memref<6x1x32xf32, #tpu.memory_space<vmem>>, %arg4: memref<2x16x32xf32, #tpu.memory_space<vmem>>, %arg5: memref<2x30x32xf32, #tpu.memory_space<vmem>>) attributes {dimension_semantics = [], scalar_prefetch = 0 : i64, scratch_operands = 1 : i64, tpu.core_type = #tpu.core_type<tc>} {
    %cst = arith.constant 0.000000e+00 : f32
    %0 = vector.broadcast %cst : f32 to vector<2x8x32xf32>
    %c0 = arith.constant 0 : index
    %c0_0 = arith.constant 0 : index
    %c0_1 = arith.constant 0 : index
    %1 = vector.load %arg5[%c0, %c0_0, %c0_1] : memref<2x30x32xf32, #tpu.memory_space<vmem>>, vector<2x8x32xf32>
    tpu.vector_store %arg5[%c0, %c0_0, %c0_1], %0 {strides = array<i32>} : memref<2x30x32xf32, #tpu.memory_space<vmem>>, vector<2x8x32xf32>,
    %cst_2 = arith.constant 0.000000e+00 : f32
    %2 = vector.broadcast %cst_2 : f32 to vector<2x6x32xf32>
    %c0_3 = arith.constant 0 : index
    %c24 = arith.constant 24 : index
    %c0_4 = arith.constant 0 : index
    %3 = vector.load %arg5[%c0_3, %c24, %c0_4] : memref<2x30x32xf32, #tpu.memory_space<vmem>>, vector<2x6x32xf32>
    tpu.vector_store %arg5[%c0_3, %c24, %c0_4], %2 {strides = array<i32>} : memref<2x30x32xf32, #tpu.memory_space<vmem>>, vector<2x6x32xf32>,
    %c0_5 = arith.constant 0 : index
    %4 = memref.load %arg0[%c0_5] : memref<32xi32, #tpu.memory_space<smem>>
    %5 = arith.index_cast %4 : i32 to index
    %c0_6 = arith.constant 0 : index
    %6 = vector.load %arg1[%5, %c0_6] : memref<50x32xf32, #tpu.memory_space<vmem>>, vector<1x32xf32>
    %c0_7 = arith.constant 0 : index
    %c8 = arith.constant 8 : index
    %c0_8 = arith.constant 0 : index
    %7 = vector.load %arg5[%c0_7, %c8, %c0_8] : memref<2x30x32xf32, #tpu.memory_space<vmem>>, vector<1x1x32xf32>
    %8 = vector.shape_cast %7 : vector<1x1x32xf32> to vector<1x32xf32>
    %9 = vector.shape_cast %6 : vector<1x32xf32> to vector<1x1x32xf32>
    tpu.vector_store %arg5[%c0_7, %c8, %c0_8], %9 {strides = array<i32>} : memref<2x30x32xf32, #tpu.memory_space<vmem>>, vector<1x1x32xf32>,
    %c2 = arith.constant 2 : index
    %10 = memref.load %arg0[%c2] : memref<32xi32, #tpu.memory_space<smem>>
    %11 = arith.index_cast %10 : i32 to index
    %c0_9 = arith.constant 0 : index
    %12 = vector.load %arg1[%11, %c0_9] : memref<50x32xf32, #tpu.memory_space<vmem>>, vector<1x32xf32>
    %c0_10 = arith.constant 0 : index
    %c9 = arith.constant 9 : index
    %c0_11 = arith.constant 0 : index
    %13 = vector.load %arg5[%c0_10, %c9, %c0_11] : memref<2x30x32xf32, #tpu.memory_space<vmem>>, vector<1x1x32xf32>
    %14 = vector.shape_cast %13 : vector<1x1x32xf32> to vector<1x32xf32>
    %15 = vector.shape_cast %12 : vector<1x32xf32> to vector<1x1x32xf32>
    tpu.vector_store %arg5[%c0_10, %c9, %c0_11], %15 {strides = array<i32>} : memref<2x30x32xf32, #tpu.memory_space<vmem>>, vector<1x1x32xf32>,
    %c4 = arith.constant 4 : index
    %16 = memref.load %arg0[%c4] : memref<32xi32, #tpu.memory_space<smem>>
    %17 = arith.index_cast %16 : i32 to index
    %c0_12 = arith.constant 0 : index
    %18 = vector.load %arg1[%17, %c0_12] : memref<50x32xf32, #tpu.memory_space<vmem>>, vector<1x32xf32>
    %c0_13 = arith.constant 0 : index
    %c10 = arith.constant 10 : index
    %c0_14 = arith.constant 0 : index
    %19 = vector.load %arg5[%c0_13, %c10, %c0_14] : memref<2x30x32xf32, #tpu.memory_space<vmem>>, vector<1x1x32xf32>
    %20 = vector.shape_cast %19 : vector<1x1x32xf32> to vector<1x32xf32>
    %21 = vector.shape_cast %18 : vector<1x32xf32> to vector<1x1x32xf32>
    tpu.vector_store %arg5[%c0_13, %c10, %c0_14], %21 {strides = array<i32>} : memref<2x30x32xf32, #tpu.memory_space<vmem>>, vector<1x1x32xf32>,
    %c6 = arith.constant 6 : index
    %22 = memref.load %arg0[%c6] : memref<32xi32, #tpu.memory_space<smem>>
    %23 = arith.index_cast %22 : i32 to index
    %c0_15 = arith.constant 0 : index
    %24 = vector.load %arg1[%23, %c0_15] : memref<50x32xf32, #tpu.memory_space<vmem>>, vector<1x32xf32>
    %c0_16 = arith.constant 0 : index
    %c11 = arith.constant 11 : index
    %c0_17 = arith.constant 0 : index
    %25 = vector.load %arg5[%c0_16, %c11, %c0_17] : memref<2x30x32xf32, #tpu.memory_space<vmem>>, vector<1x1x32xf32>
    %26 = vector.shape_cast %25 : vector<1x1x32xf32> to vector<1x32xf32>
    %27 = vector.shape_cast %24 : vector<1x32xf32> to vector<1x1x32xf32>
    tpu.vector_store %arg5[%c0_16, %c11, %c0_17], %27 {strides = array<i32>} : memref<2x30x32xf32, #tpu.memory_space<vmem>>, vector<1x1x32xf32>,
    %c8_18 = arith.constant 8 : index
    %28 = memref.load %arg0[%c8_18] : memref<32xi32, #tpu.memory_space<smem>>
    %29 = arith.index_cast %28 : i32 to index
    %c0_19 = arith.constant 0 : index
    %30 = vector.load %arg1[%29, %c0_19] : memref<50x32xf32, #tpu.memory_space<vmem>>, vector<1x32xf32>
    %c0_20 = arith.constant 0 : index
    %c12 = arith.constant 12 : index
    %c0_21 = arith.constant 0 : index
    %31 = vector.load %arg5[%c0_20, %c12, %c0_21] : memref<2x30x32xf32, #tpu.memory_space<vmem>>, vector<1x1x32xf32>
    %32 = vector.shape_cast %31 : vector<1x1x32xf32> to vector<1x32xf32>
    %33 = vector.shape_cast %30 : vector<1x32xf32> to vector<1x1x32xf32>
    tpu.vector_store %arg5[%c0_20, %c12, %c0_21], %33 {strides = array<i32>} : memref<2x30x32xf32, #tpu.memory_space<vmem>>, vector<1x1x32xf32>,
    %c10_22 = arith.constant 10 : index
    %34 = memref.load %arg0[%c10_22] : memref<32xi32, #tpu.memory_space<smem>>
    %35 = arith.index_cast %34 : i32 to index
    %c0_23 = arith.constant 0 : index
    %36 = vector.load %arg1[%35, %c0_23] : memref<50x32xf32, #tpu.memory_space<vmem>>, vector<1x32xf32>
    %c0_24 = arith.constant 0 : index
    %c13 = arith.constant 13 : index
    %c0_25 = arith.constant 0 : index
    %37 = vector.load %arg5[%c0_24, %c13, %c0_25] : memref<2x30x32xf32, #tpu.memory_space<vmem>>, vector<1x1x32xf32>
    %38 = vector.shape_cast %37 : vector<1x1x32xf32> to vector<1x32xf32>
    %39 = vector.shape_cast %36 : vector<1x32xf32> to vector<1x1x32xf32>
    tpu.vector_store %arg5[%c0_24, %c13, %c0_25], %39 {strides = array<i32>} : memref<2x30x32xf32, #tpu.memory_space<vmem>>, vector<1x1x32xf32>,
    %c12_26 = arith.constant 12 : index
    %40 = memref.load %arg0[%c12_26] : memref<32xi32, #tpu.memory_space<smem>>
    %41 = arith.index_cast %40 : i32 to index
    %c0_27 = arith.constant 0 : index
    %42 = vector.load %arg1[%41, %c0_27] : memref<50x32xf32, #tpu.memory_space<vmem>>, vector<1x32xf32>
    %c0_28 = arith.constant 0 : index
    %c14 = arith.constant 14 : index
    %c0_29 = arith.constant 0 : index
    %43 = vector.load %arg5[%c0_28, %c14, %c0_29] : memref<2x30x32xf32, #tpu.memory_space<vmem>>, vector<1x1x32xf32>
    %44 = vector.shape_cast %43 : vector<1x1x32xf32> to vector<1x32xf32>
    %45 = vector.shape_cast %42 : vector<1x32xf32> to vector<1x1x32xf32>
    tpu.vector_store %arg5[%c0_28, %c14, %c0_29], %45 {strides = array<i32>} : memref<2x30x32xf32, #tpu.memory_space<vmem>>, vector<1x1x32xf32>,
    %c14_30 = arith.constant 14 : index
    %46 = memref.load %arg0[%c14_30] : memref<32xi32, #tpu.memory_space<smem>>
    %47 = arith.index_cast %46 : i32 to index
    %c0_31 = arith.constant 0 : index
    %48 = vector.load %arg1[%47, %c0_31] : memref<50x32xf32, #tpu.memory_space<vmem>>, vector<1x32xf32>
    %c0_32 = arith.constant 0 : index
    %c15 = arith.constant 15 : index
    %c0_33 = arith.constant 0 : index
    %49 = vector.load %arg5[%c0_32, %c15, %c0_33] : memref<2x30x32xf32, #tpu.memory_space<vmem>>, vector<1x1x32xf32>
    %50 = vector.shape_cast %49 : vector<1x1x32xf32> to vector<1x32xf32>
    %51 = vector.shape_cast %48 : vector<1x32xf32> to vector<1x1x32xf32>
    tpu.vector_store %arg5[%c0_32, %c15, %c0_33], %51 {strides = array<i32>} : memref<2x30x32xf32, #tpu.memory_space<vmem>>, vector<1x1x32xf32>,
    %c16 = arith.constant 16 : index
    %52 = memref.load %arg0[%c16] : memref<32xi32, #tpu.memory_space<smem>>
    %53 = arith.index_cast %52 : i32 to index
    %c0_34 = arith.constant 0 : index
    %54 = vector.load %arg1[%53, %c0_34] : memref<50x32xf32, #tpu.memory_space<vmem>>, vector<1x32xf32>
    %c0_35 = arith.constant 0 : index
    %c16_36 = arith.constant 16 : index
    %c0_37 = arith.constant 0 : index
    %55 = vector.load %arg5[%c0_35, %c16_36, %c0_37] : memref<2x30x32xf32, #tpu.memory_space<vmem>>, vector<1x1x32xf32>
    %56 = vector.shape_cast %55 : vector<1x1x32xf32> to vector<1x32xf32>
    %57 = vector.shape_cast %54 : vector<1x32xf32> to vector<1x1x32xf32>
    tpu.vector_store %arg5[%c0_35, %c16_36, %c0_37], %57 {strides = array<i32>} : memref<2x30x32xf32, #tpu.memory_space<vmem>>, vector<1x1x32xf32>,
    %c18 = arith.constant 18 : index
    %58 = memref.load %arg0[%c18] : memref<32xi32, #tpu.memory_space<smem>>
    %59 = arith.index_cast %58 : i32 to index
    %c0_38 = arith.constant 0 : index
    %60 = vector.load %arg1[%59, %c0_38] : memref<50x32xf32, #tpu.memory_space<vmem>>, vector<1x32xf32>
    %c0_39 = arith.constant 0 : index
    %c17 = arith.constant 17 : index
    %c0_40 = arith.constant 0 : index
    %61 = vector.load %arg5[%c0_39, %c17, %c0_40] : memref<2x30x32xf32, #tpu.memory_space<vmem>>, vector<1x1x32xf32>
    %62 = vector.shape_cast %61 : vector<1x1x32xf32> to vector<1x32xf32>
    %63 = vector.shape_cast %60 : vector<1x32xf32> to vector<1x1x32xf32>
    tpu.vector_store %arg5[%c0_39, %c17, %c0_40], %63 {strides = array<i32>} : memref<2x30x32xf32, #tpu.memory_space<vmem>>, vector<1x1x32xf32>,
    %c20 = arith.constant 20 : index
    %64 = memref.load %arg0[%c20] : memref<32xi32, #tpu.memory_space<smem>>
    %65 = arith.index_cast %64 : i32 to index
    %c0_41 = arith.constant 0 : index
    %66 = vector.load %arg1[%65, %c0_41] : memref<50x32xf32, #tpu.memory_space<vmem>>, vector<1x32xf32>
    %c0_42 = arith.constant 0 : index
    %c18_43 = arith.constant 18 : index
    %c0_44 = arith.constant 0 : index
    %67 = vector.load %arg5[%c0_42, %c18_43, %c0_44] : memref<2x30x32xf32, #tpu.memory_space<vmem>>, vector<1x1x32xf32>
    %68 = vector.shape_cast %67 : vector<1x1x32xf32> to vector<1x32xf32>
    %69 = vector.shape_cast %66 : vector<1x32xf32> to vector<1x1x32xf32>
    tpu.vector_store %arg5[%c0_42, %c18_43, %c0_44], %69 {strides = array<i32>} : memref<2x30x32xf32, #tpu.memory_space<vmem>>, vector<1x1x32xf32>,
    %c22 = arith.constant 22 : index
    %70 = memref.load %arg0[%c22] : memref<32xi32, #tpu.memory_space<smem>>
    %71 = arith.index_cast %70 : i32 to index
    %c0_45 = arith.constant 0 : index
    %72 = vector.load %arg1[%71, %c0_45] : memref<50x32xf32, #tpu.memory_space<vmem>>, vector<1x32xf32>
    %c0_46 = arith.constant 0 : index
    %c19 = arith.constant 19 : index
    %c0_47 = arith.constant 0 : index
    %73 = vector.load %arg5[%c0_46, %c19, %c0_47] : memref<2x30x32xf32, #tpu.memory_space<vmem>>, vector<1x1x32xf32>
    %74 = vector.shape_cast %73 : vector<1x1x32xf32> to vector<1x32xf32>
    %75 = vector.shape_cast %72 : vector<1x32xf32> to vector<1x1x32xf32>
    tpu.vector_store %arg5[%c0_46, %c19, %c0_47], %75 {strides = array<i32>} : memref<2x30x32xf32, #tpu.memory_space<vmem>>, vector<1x1x32xf32>,
    %c24_48 = arith.constant 24 : index
    %76 = memref.load %arg0[%c24_48] : memref<32xi32, #tpu.memory_space<smem>>
    %77 = arith.index_cast %76 : i32 to index
    %c0_49 = arith.constant 0 : index
    %78 = vector.load %arg1[%77, %c0_49] : memref<50x32xf32, #tpu.memory_space<vmem>>, vector<1x32xf32>
    %c0_50 = arith.constant 0 : index
    %c20_51 = arith.constant 20 : index
    %c0_52 = arith.constant 0 : index
    %79 = vector.load %arg5[%c0_50, %c20_51, %c0_52] : memref<2x30x32xf32, #tpu.memory_space<vmem>>, vector<1x1x32xf32>
    %80 = vector.shape_cast %79 : vector<1x1x32xf32> to vector<1x32xf32>
    %81 = vector.shape_cast %78 : vector<1x32xf32> to vector<1x1x32xf32>
    tpu.vector_store %arg5[%c0_50, %c20_51, %c0_52], %81 {strides = array<i32>} : memref<2x30x32xf32, #tpu.memory_space<vmem>>, vector<1x1x32xf32>,
    %c26 = arith.constant 26 : index
    %82 = memref.load %arg0[%c26] : memref<32xi32, #tpu.memory_space<smem>>
    %83 = arith.index_cast %82 : i32 to index
    %c0_53 = arith.constant 0 : index
    %84 = vector.load %arg1[%83, %c0_53] : memref<50x32xf32, #tpu.memory_space<vmem>>, vector<1x32xf32>
    %c0_54 = arith.constant 0 : index
    %c21 = arith.constant 21 : index
    %c0_55 = arith.constant 0 : index
    %85 = vector.load %arg5[%c0_54, %c21, %c0_55] : memref<2x30x32xf32, #tpu.memory_space<vmem>>, vector<1x1x32xf32>
    %86 = vector.shape_cast %85 : vector<1x1x32xf32> to vector<1x32xf32>
    %87 = vector.shape_cast %84 : vector<1x32xf32> to vector<1x1x32xf32>
    tpu.vector_store %arg5[%c0_54, %c21, %c0_55], %87 {strides = array<i32>} : memref<2x30x32xf32, #tpu.memory_space<vmem>>, vector<1x1x32xf32>,
    %c28 = arith.constant 28 : index
    %88 = memref.load %arg0[%c28] : memref<32xi32, #tpu.memory_space<smem>>
    %89 = arith.index_cast %88 : i32 to index
    %c0_56 = arith.constant 0 : index
    %90 = vector.load %arg1[%89, %c0_56] : memref<50x32xf32, #tpu.memory_space<vmem>>, vector<1x32xf32>
    %c0_57 = arith.constant 0 : index
    %c22_58 = arith.constant 22 : index
    %c0_59 = arith.constant 0 : index
    %91 = vector.load %arg5[%c0_57, %c22_58, %c0_59] : memref<2x30x32xf32, #tpu.memory_space<vmem>>, vector<1x1x32xf32>
    %92 = vector.shape_cast %91 : vector<1x1x32xf32> to vector<1x32xf32>
    %93 = vector.shape_cast %90 : vector<1x32xf32> to vector<1x1x32xf32>
    tpu.vector_store %arg5[%c0_57, %c22_58, %c0_59], %93 {strides = array<i32>} : memref<2x30x32xf32, #tpu.memory_space<vmem>>, vector<1x1x32xf32>,
    %c30 = arith.constant 30 : index
    %94 = memref.load %arg0[%c30] : memref<32xi32, #tpu.memory_space<smem>>
    %95 = arith.index_cast %94 : i32 to index
    %c0_60 = arith.constant 0 : index
    %96 = vector.load %arg1[%95, %c0_60] : memref<50x32xf32, #tpu.memory_space<vmem>>, vector<1x32xf32>
    %c0_61 = arith.constant 0 : index
    %c23 = arith.constant 23 : index
    %c0_62 = arith.constant 0 : index
    %97 = vector.load %arg5[%c0_61, %c23, %c0_62] : memref<2x30x32xf32, #tpu.memory_space<vmem>>, vector<1x1x32xf32>
    %98 = vector.shape_cast %97 : vector<1x1x32xf32> to vector<1x32xf32>
    %99 = vector.shape_cast %96 : vector<1x32xf32> to vector<1x1x32xf32>
    tpu.vector_store %arg5[%c0_61, %c23, %c0_62], %99 {strides = array<i32>} : memref<2x30x32xf32, #tpu.memory_space<vmem>>, vector<1x1x32xf32>,
    %c1 = arith.constant 1 : index
    %100 = memref.load %arg0[%c1] : memref<32xi32, #tpu.memory_space<smem>>
    %101 = arith.index_cast %100 : i32 to index
    %c0_63 = arith.constant 0 : index
    %102 = vector.load %arg1[%101, %c0_63] : memref<50x32xf32, #tpu.memory_space<vmem>>, vector<1x32xf32>
    %c1_64 = arith.constant 1 : index
    %c8_65 = arith.constant 8 : index
    %c0_66 = arith.constant 0 : index
    %103 = vector.load %arg5[%c1_64, %c8_65, %c0_66] : memref<2x30x32xf32, #tpu.memory_space<vmem>>, vector<1x1x32xf32>
    %104 = vector.shape_cast %103 : vector<1x1x32xf32> to vector<1x32xf32>
    %105 = vector.shape_cast %102 : vector<1x32xf32> to vector<1x1x32xf32>
    tpu.vector_store %arg5[%c1_64, %c8_65, %c0_66], %105 {strides = array<i32>} : memref<2x30x32xf32, #tpu.memory_space<vmem>>, vector<1x1x32xf32>,
    %c3 = arith.constant 3 : index
    %106 = memref.load %arg0[%c3] : memref<32xi32, #tpu.memory_space<smem>>
    %107 = arith.index_cast %106 : i32 to index
    %c0_67 = arith.constant 0 : index
    %108 = vector.load %arg1[%107, %c0_67] : memref<50x32xf32, #tpu.memory_space<vmem>>, vector<1x32xf32>
    %c1_68 = arith.constant 1 : index
    %c9_69 = arith.constant 9 : index
    %c0_70 = arith.constant 0 : index
    %109 = vector.load %arg5[%c1_68, %c9_69, %c0_70] : memref<2x30x32xf32, #tpu.memory_space<vmem>>, vector<1x1x32xf32>
    %110 = vector.shape_cast %109 : vector<1x1x32xf32> to vector<1x32xf32>
    %111 = vector.shape_cast %108 : vector<1x32xf32> to vector<1x1x32xf32>
    tpu.vector_store %arg5[%c1_68, %c9_69, %c0_70], %111 {strides = array<i32>} : memref<2x30x32xf32, #tpu.memory_space<vmem>>, vector<1x1x32xf32>,
    %c5 = arith.constant 5 : index
    %112 = memref.load %arg0[%c5] : memref<32xi32, #tpu.memory_space<smem>>
    %113 = arith.index_cast %112 : i32 to index
    %c0_71 = arith.constant 0 : index
    %114 = vector.load %arg1[%113, %c0_71] : memref<50x32xf32, #tpu.memory_space<vmem>>, vector<1x32xf32>
    %c1_72 = arith.constant 1 : index
    %c10_73 = arith.constant 10 : index
    %c0_74 = arith.constant 0 : index
    %115 = vector.load %arg5[%c1_72, %c10_73, %c0_74] : memref<2x30x32xf32, #tpu.memory_space<vmem>>, vector<1x1x32xf32>
    %116 = vector.shape_cast %115 : vector<1x1x32xf32> to vector<1x32xf32>
    %117 = vector.shape_cast %114 : vector<1x32xf32> to vector<1x1x32xf32>
    tpu.vector_store %arg5[%c1_72, %c10_73, %c0_74], %117 {strides = array<i32>} : memref<2x30x32xf32, #tpu.memory_space<vmem>>, vector<1x1x32xf32>,
    %c7 = arith.constant 7 : index
    %118 = memref.load %arg0[%c7] : memref<32xi32, #tpu.memory_space<smem>>
    %119 = arith.index_cast %118 : i32 to index
    %c0_75 = arith.constant 0 : index
    %120 = vector.load %arg1[%119, %c0_75] : memref<50x32xf32, #tpu.memory_space<vmem>>, vector<1x32xf32>
    %c1_76 = arith.constant 1 : index
    %c11_77 = arith.constant 11 : index
    %c0_78 = arith.constant 0 : index
    %121 = vector.load %arg5[%c1_76, %c11_77, %c0_78] : memref<2x30x32xf32, #tpu.memory_space<vmem>>, vector<1x1x32xf32>
    %122 = vector.shape_cast %121 : vector<1x1x32xf32> to vector<1x32xf32>
    %123 = vector.shape_cast %120 : vector<1x32xf32> to vector<1x1x32xf32>
    tpu.vector_store %arg5[%c1_76, %c11_77, %c0_78], %123 {strides = array<i32>} : memref<2x30x32xf32, #tpu.memory_space<vmem>>, vector<1x1x32xf32>,
    %c9_79 = arith.constant 9 : index
    %124 = memref.load %arg0[%c9_79] : memref<32xi32, #tpu.memory_space<smem>>
    %125 = arith.index_cast %124 : i32 to index
    %c0_80 = arith.constant 0 : index
    %126 = vector.load %arg1[%125, %c0_80] : memref<50x32xf32, #tpu.memory_space<vmem>>, vector<1x32xf32>
    %c1_81 = arith.constant 1 : index
    %c12_82 = arith.constant 12 : index
    %c0_83 = arith.constant 0 : index
    %127 = vector.load %arg5[%c1_81, %c12_82, %c0_83] : memref<2x30x32xf32, #tpu.memory_space<vmem>>, vector<1x1x32xf32>
    %128 = vector.shape_cast %127 : vector<1x1x32xf32> to vector<1x32xf32>
    %129 = vector.shape_cast %126 : vector<1x32xf32> to vector<1x1x32xf32>
    tpu.vector_store %arg5[%c1_81, %c12_82, %c0_83], %129 {strides = array<i32>} : memref<2x30x32xf32, #tpu.memory_space<vmem>>, vector<1x1x32xf32>,
    %c11_84 = arith.constant 11 : index
    %130 = memref.load %arg0[%c11_84] : memref<32xi32, #tpu.memory_space<smem>>
    %131 = arith.index_cast %130 : i32 to index
    %c0_85 = arith.constant 0 : index
    %132 = vector.load %arg1[%131, %c0_85] : memref<50x32xf32, #tpu.memory_space<vmem>>, vector<1x32xf32>
    %c1_86 = arith.constant 1 : index
    %c13_87 = arith.constant 13 : index
    %c0_88 = arith.constant 0 : index
    %133 = vector.load %arg5[%c1_86, %c13_87, %c0_88] : memref<2x30x32xf32, #tpu.memory_space<vmem>>, vector<1x1x32xf32>
    %134 = vector.shape_cast %133 : vector<1x1x32xf32> to vector<1x32xf32>
    %135 = vector.shape_cast %132 : vector<1x32xf32> to vector<1x1x32xf32>
    tpu.vector_store %arg5[%c1_86, %c13_87, %c0_88], %135 {strides = array<i32>} : memref<2x30x32xf32, #tpu.memory_space<vmem>>, vector<1x1x32xf32>,
    %c13_89 = arith.constant 13 : index
    %136 = memref.load %arg0[%c13_89] : memref<32xi32, #tpu.memory_space<smem>>
    %137 = arith.index_cast %136 : i32 to index
    %c0_90 = arith.constant 0 : index
    %138 = vector.load %arg1[%137, %c0_90] : memref<50x32xf32, #tpu.memory_space<vmem>>, vector<1x32xf32>
    %c1_91 = arith.constant 1 : index
    %c14_92 = arith.constant 14 : index
    %c0_93 = arith.constant 0 : index
    %139 = vector.load %arg5[%c1_91, %c14_92, %c0_93] : memref<2x30x32xf32, #tpu.memory_space<vmem>>, vector<1x1x32xf32>
    %140 = vector.shape_cast %139 : vector<1x1x32xf32> to vector<1x32xf32>
    %141 = vector.shape_cast %138 : vector<1x32xf32> to vector<1x1x32xf32>
    tpu.vector_store %arg5[%c1_91, %c14_92, %c0_93], %141 {strides = array<i32>} : memref<2x30x32xf32, #tpu.memory_space<vmem>>, vector<1x1x32xf32>,
    %c15_94 = arith.constant 15 : index
    %142 = memref.load %arg0[%c15_94] : memref<32xi32, #tpu.memory_space<smem>>
    %143 = arith.index_cast %142 : i32 to index
    %c0_95 = arith.constant 0 : index
    %144 = vector.load %arg1[%143, %c0_95] : memref<50x32xf32, #tpu.memory_space<vmem>>, vector<1x32xf32>
    %c1_96 = arith.constant 1 : index
    %c15_97 = arith.constant 15 : index
    %c0_98 = arith.constant 0 : index
    %145 = vector.load %arg5[%c1_96, %c15_97, %c0_98] : memref<2x30x32xf32, #tpu.memory_space<vmem>>, vector<1x1x32xf32>
    %146 = vector.shape_cast %145 : vector<1x1x32xf32> to vector<1x32xf32>
    %147 = vector.shape_cast %144 : vector<1x32xf32> to vector<1x1x32xf32>
    tpu.vector_store %arg5[%c1_96, %c15_97, %c0_98], %147 {strides = array<i32>} : memref<2x30x32xf32, #tpu.memory_space<vmem>>, vector<1x1x32xf32>,
    %c17_99 = arith.constant 17 : index
    %148 = memref.load %arg0[%c17_99] : memref<32xi32, #tpu.memory_space<smem>>
    %149 = arith.index_cast %148 : i32 to index
    %c0_100 = arith.constant 0 : index
    %150 = vector.load %arg1[%149, %c0_100] : memref<50x32xf32, #tpu.memory_space<vmem>>, vector<1x32xf32>
    %c1_101 = arith.constant 1 : index
    %c16_102 = arith.constant 16 : index
    %c0_103 = arith.constant 0 : index
    %151 = vector.load %arg5[%c1_101, %c16_102, %c0_103] : memref<2x30x32xf32, #tpu.memory_space<vmem>>, vector<1x1x32xf32>
    %152 = vector.shape_cast %151 : vector<1x1x32xf32> to vector<1x32xf32>
    %153 = vector.shape_cast %150 : vector<1x32xf32> to vector<1x1x32xf32>
    tpu.vector_store %arg5[%c1_101, %c16_102, %c0_103], %153 {strides = array<i32>} : memref<2x30x32xf32, #tpu.memory_space<vmem>>, vector<1x1x32xf32>,
    %c19_104 = arith.constant 19 : index
    %154 = memref.load %arg0[%c19_104] : memref<32xi32, #tpu.memory_space<smem>>
    %155 = arith.index_cast %154 : i32 to index
    %c0_105 = arith.constant 0 : index
    %156 = vector.load %arg1[%155, %c0_105] : memref<50x32xf32, #tpu.memory_space<vmem>>, vector<1x32xf32>
    %c1_106 = arith.constant 1 : index
    %c17_107 = arith.constant 17 : index
    %c0_108 = arith.constant 0 : index
    %157 = vector.load %arg5[%c1_106, %c17_107, %c0_108] : memref<2x30x32xf32, #tpu.memory_space<vmem>>, vector<1x1x32xf32>
    %158 = vector.shape_cast %157 : vector<1x1x32xf32> to vector<1x32xf32>
    %159 = vector.shape_cast %156 : vector<1x32xf32> to vector<1x1x32xf32>
    tpu.vector_store %arg5[%c1_106, %c17_107, %c0_108], %159 {strides = array<i32>} : memref<2x30x32xf32, #tpu.memory_space<vmem>>, vector<1x1x32xf32>,
    %c21_109 = arith.constant 21 : index
    %160 = memref.load %arg0[%c21_109] : memref<32xi32, #tpu.memory_space<smem>>
    %161 = arith.index_cast %160 : i32 to index
    %c0_110 = arith.constant 0 : index
    %162 = vector.load %arg1[%161, %c0_110] : memref<50x32xf32, #tpu.memory_space<vmem>>, vector<1x32xf32>
    %c1_111 = arith.constant 1 : index
    %c18_112 = arith.constant 18 : index
    %c0_113 = arith.constant 0 : index
    %163 = vector.load %arg5[%c1_111, %c18_112, %c0_113] : memref<2x30x32xf32, #tpu.memory_space<vmem>>, vector<1x1x32xf32>
    %164 = vector.shape_cast %163 : vector<1x1x32xf32> to vector<1x32xf32>
    %165 = vector.shape_cast %162 : vector<1x32xf32> to vector<1x1x32xf32>
    tpu.vector_store %arg5[%c1_111, %c18_112, %c0_113], %165 {strides = array<i32>} : memref<2x30x32xf32, #tpu.memory_space<vmem>>, vector<1x1x32xf32>,
    %c23_114 = arith.constant 23 : index
    %166 = memref.load %arg0[%c23_114] : memref<32xi32, #tpu.memory_space<smem>>
    %167 = arith.index_cast %166 : i32 to index
    %c0_115 = arith.constant 0 : index
    %168 = vector.load %arg1[%167, %c0_115] : memref<50x32xf32, #tpu.memory_space<vmem>>, vector<1x32xf32>
    %c1_116 = arith.constant 1 : index
    %c19_117 = arith.constant 19 : index
    %c0_118 = arith.constant 0 : index
    %169 = vector.load %arg5[%c1_116, %c19_117, %c0_118] : memref<2x30x32xf32, #tpu.memory_space<vmem>>, vector<1x1x32xf32>
    %170 = vector.shape_cast %169 : vector<1x1x32xf32> to vector<1x32xf32>
    %171 = vector.shape_cast %168 : vector<1x32xf32> to vector<1x1x32xf32>
    tpu.vector_store %arg5[%c1_116, %c19_117, %c0_118], %171 {strides = array<i32>} : memref<2x30x32xf32, #tpu.memory_space<vmem>>, vector<1x1x32xf32>,
    %c25 = arith.constant 25 : index
    %172 = memref.load %arg0[%c25] : memref<32xi32, #tpu.memory_space<smem>>
    %173 = arith.index_cast %172 : i32 to index
    %c0_119 = arith.constant 0 : index
    %174 = vector.load %arg1[%173, %c0_119] : memref<50x32xf32, #tpu.memory_space<vmem>>, vector<1x32xf32>
    %c1_120 = arith.constant 1 : index
    %c20_121 = arith.constant 20 : index
    %c0_122 = arith.constant 0 : index
    %175 = vector.load %arg5[%c1_120, %c20_121, %c0_122] : memref<2x30x32xf32, #tpu.memory_space<vmem>>, vector<1x1x32xf32>
    %176 = vector.shape_cast %175 : vector<1x1x32xf32> to vector<1x32xf32>
    %177 = vector.shape_cast %174 : vector<1x32xf32> to vector<1x1x32xf32>
    tpu.vector_store %arg5[%c1_120, %c20_121, %c0_122], %177 {strides = array<i32>} : memref<2x30x32xf32, #tpu.memory_space<vmem>>, vector<1x1x32xf32>,
    %c27 = arith.constant 27 : index
    %178 = memref.load %arg0[%c27] : memref<32xi32, #tpu.memory_space<smem>>
    %179 = arith.index_cast %178 : i32 to index
    %c0_123 = arith.constant 0 : index
    %180 = vector.load %arg1[%179, %c0_123] : memref<50x32xf32, #tpu.memory_space<vmem>>, vector<1x32xf32>
    %c1_124 = arith.constant 1 : index
    %c21_125 = arith.constant 21 : index
    %c0_126 = arith.constant 0 : index
    %181 = vector.load %arg5[%c1_124, %c21_125, %c0_126] : memref<2x30x32xf32, #tpu.memory_space<vmem>>, vector<1x1x32xf32>
    %182 = vector.shape_cast %181 : vector<1x1x32xf32> to vector<1x32xf32>
    %183 = vector.shape_cast %180 : vector<1x32xf32> to vector<1x1x32xf32>
    tpu.vector_store %arg5[%c1_124, %c21_125, %c0_126], %183 {strides = array<i32>} : memref<2x30x32xf32, #tpu.memory_space<vmem>>, vector<1x1x32xf32>,
    %c29 = arith.constant 29 : index
    %184 = memref.load %arg0[%c29] : memref<32xi32, #tpu.memory_space<smem>>
    %185 = arith.index_cast %184 : i32 to index
    %c0_127 = arith.constant 0 : index
    %186 = vector.load %arg1[%185, %c0_127] : memref<50x32xf32, #tpu.memory_space<vmem>>, vector<1x32xf32>
    %c1_128 = arith.constant 1 : index
    %c22_129 = arith.constant 22 : index
    %c0_130 = arith.constant 0 : index
    %187 = vector.load %arg5[%c1_128, %c22_129, %c0_130] : memref<2x30x32xf32, #tpu.memory_space<vmem>>, vector<1x1x32xf32>
    %188 = vector.shape_cast %187 : vector<1x1x32xf32> to vector<1x32xf32>
    %189 = vector.shape_cast %186 : vector<1x32xf32> to vector<1x1x32xf32>
    tpu.vector_store %arg5[%c1_128, %c22_129, %c0_130], %189 {strides = array<i32>} : memref<2x30x32xf32, #tpu.memory_space<vmem>>, vector<1x1x32xf32>,
    %c31 = arith.constant 31 : index
    %190 = memref.load %arg0[%c31] : memref<32xi32, #tpu.memory_space<smem>>
    %191 = arith.index_cast %190 : i32 to index
    %c0_131 = arith.constant 0 : index
    %192 = vector.load %arg1[%191, %c0_131] : memref<50x32xf32, #tpu.memory_space<vmem>>, vector<1x32xf32>
    %c1_132 = arith.constant 1 : index
    %c23_133 = arith.constant 23 : index
    %c0_134 = arith.constant 0 : index
    %193 = vector.load %arg5[%c1_132, %c23_133, %c0_134] : memref<2x30x32xf32, #tpu.memory_space<vmem>>, vector<1x1x32xf32>
    %194 = vector.shape_cast %193 : vector<1x1x32xf32> to vector<1x32xf32>
    %195 = vector.shape_cast %192 : vector<1x32xf32> to vector<1x1x32xf32>
    tpu.vector_store %arg5[%c1_132, %c23_133, %c0_134], %195 {strides = array<i32>} : memref<2x30x32xf32, #tpu.memory_space<vmem>>, vector<1x1x32xf32>,
    %c0_135 = arith.constant 0 : index
    %c6_136 = arith.constant 6 : index
    %c0_137 = arith.constant 0 : index
    %196 = vector.load %arg5[%c0_135, %c6_136, %c0_137] : memref<2x30x32xf32, #tpu.memory_space<vmem>>, vector<2x24x32xf32>
    %197 = vector.shape_cast %196 : vector<2x24x32xf32> to vector<48x32xf32>
    %c0_138 = arith.constant 0 : index
    %c0_139 = arith.constant 0 : index
    %c0_140 = arith.constant 0 : index
    %198 = vector.load %arg2[%c0_138, %c0_139, %c0_140] : memref<6x32x96xf32, #tpu.memory_space<vmem>>, vector<1x32x96xf32>
    %199 = vector.shape_cast %198 : vector<1x32x96xf32> to vector<32x96xf32>
    %cst_141 = arith.constant dense<0.000000e+00> : vector<48x96xf32>
    %200 = tpu.matmul %197, %199, %cst_141 {dimension_numbers = #tpu.dot_dimension_numbers<[1], [0], [0], [1], [0, 0, 1, 1], [], []>} : vector<48x32xf32>, vector<32x96xf32>, vector<48x96xf32> -> vector<48x96xf32>
    %201 = vector.shape_cast %200 : vector<48x96xf32> to vector<2x24x96xf32>
    %c0_142 = arith.constant 0 : index
    %c0_143 = arith.constant 0 : index
    %c0_144 = arith.constant 0 : index
    %202 = vector.load %arg3[%c0_142, %c0_143, %c0_144] : memref<6x1x32xf32, #tpu.memory_space<vmem>>, vector<1x1x32xf32>
    %203 = vector.shape_cast %202 : vector<1x1x32xf32> to vector<1x32xf32>
    %204 = vector.extract_strided_slice %201 {offsets = [0, 0, 0], sizes = [2, 16, 32], strides = [1, 1, 1]} : vector<2x24x96xf32> to vector<2x16x32xf32>
    %205 = vector.shape_cast %203 : vector<1x32xf32> to vector<1x1x32xf32>
    %206 = vector.broadcast %205 : vector<1x1x32xf32> to vector<2x16x32xf32>
    %207 = arith.addf %206, %204 : vector<2x16x32xf32>
    %208 = vector.extract_strided_slice %201 {offsets = [0, 2, 32], sizes = [2, 16, 32], strides = [1, 1, 1]} : vector<2x24x96xf32> to vector<2x16x32xf32>
    %209 = arith.addf %207, %208 : vector<2x16x32xf32>
    %210 = vector.extract_strided_slice %201 {offsets = [0, 4, 64], sizes = [2, 16, 32], strides = [1, 1, 1]} : vector<2x24x96xf32> to vector<2x16x32xf32>
    %211 = arith.addf %209, %210 : vector<2x16x32xf32>
    %cst_145 = arith.constant 0.000000e+00 : f32
    %212 = vector.broadcast %cst_145 : f32 to vector<2x16x32xf32>
    %213 = arith.cmpf oge, %211, %212 : vector<2x16x32xf32>
    %cst_146 = arith.constant 0.00999999977 : f32
    %214 = vector.broadcast %cst_146 : f32 to vector<2x16x32xf32>
    %215 = arith.mulf %214, %211 : vector<2x16x32xf32>
    %216 = arith.select %213, %211, %215 : vector<2x16x32xi1>, vector<2x16x32xf32>
    %c0_147 = arith.constant 0 : index
    %c8_148 = arith.constant 8 : index
    %c0_149 = arith.constant 0 : index
    %217 = vector.load %arg5[%c0_147, %c8_148, %c0_149] : memref<2x30x32xf32, #tpu.memory_space<vmem>>, vector<2x16x32xf32>
    tpu.vector_store %arg5[%c0_147, %c8_148, %c0_149], %216 {strides = array<i32>} : memref<2x30x32xf32, #tpu.memory_space<vmem>>, vector<2x16x32xf32>,
    %c0_150 = arith.constant 0 : index
    %c6_151 = arith.constant 6 : index
    %c0_152 = arith.constant 0 : index
    %218 = vector.load %arg5[%c0_150, %c6_151, %c0_152] : memref<2x30x32xf32, #tpu.memory_space<vmem>>, vector<2x24x32xf32>
    %219 = vector.shape_cast %218 : vector<2x24x32xf32> to vector<48x32xf32>
    %c1_153 = arith.constant 1 : index
    %c0_154 = arith.constant 0 : index
    %c0_155 = arith.constant 0 : index
    %220 = vector.load %arg2[%c1_153, %c0_154, %c0_155] : memref<6x32x96xf32, #tpu.memory_space<vmem>>, vector<1x32x96xf32>
    %221 = vector.shape_cast %220 : vector<1x32x96xf32> to vector<32x96xf32>
    %cst_156 = arith.constant dense<0.000000e+00> : vector<48x96xf32>
    %222 = tpu.matmul %219, %221, %cst_156 {dimension_numbers = #tpu.dot_dimension_numbers<[1], [0], [0], [1], [0, 0, 1, 1], [], []>} : vector<48x32xf32>, vector<32x96xf32>, vector<48x96xf32> -> vector<48x96xf32>
    %223 = vector.shape_cast %222 : vector<48x96xf32> to vector<2x24x96xf32>
    %c1_157 = arith.constant 1 : index
    %c0_158 = arith.constant 0 : index
    %c0_159 = arith.constant 0 : index
    %224 = vector.load %arg3[%c1_157, %c0_158, %c0_159] : memref<6x1x32xf32, #tpu.memory_space<vmem>>, vector<1x1x32xf32>
    %225 = vector.shape_cast %224 : vector<1x1x32xf32> to vector<1x32xf32>
    %226 = vector.extract_strided_slice %223 {offsets = [0, 0, 0], sizes = [2, 16, 32], strides = [1, 1, 1]} : vector<2x24x96xf32> to vector<2x16x32xf32>
    %227 = vector.shape_cast %225 : vector<1x32xf32> to vector<1x1x32xf32>
    %228 = vector.broadcast %227 : vector<1x1x32xf32> to vector<2x16x32xf32>
    %229 = arith.addf %228, %226 : vector<2x16x32xf32>
    %230 = vector.extract_strided_slice %223 {offsets = [0, 2, 32], sizes = [2, 16, 32], strides = [1, 1, 1]} : vector<2x24x96xf32> to vector<2x16x32xf32>
    %231 = arith.addf %229, %230 : vector<2x16x32xf32>
    %232 = vector.extract_strided_slice %223 {offsets = [0, 4, 64], sizes = [2, 16, 32], strides = [1, 1, 1]} : vector<2x24x96xf32> to vector<2x16x32xf32>
    %233 = arith.addf %231, %232 : vector<2x16x32xf32>
    %cst_160 = arith.constant 0.000000e+00 : f32
    %234 = vector.broadcast %cst_160 : f32 to vector<2x16x32xf32>
    %235 = arith.cmpf oge, %233, %234 : vector<2x16x32xf32>
    %cst_161 = arith.constant 0.00999999977 : f32
    %236 = vector.broadcast %cst_161 : f32 to vector<2x16x32xf32>
    %237 = arith.mulf %236, %233 : vector<2x16x32xf32>
    %238 = arith.select %235, %233, %237 : vector<2x16x32xi1>, vector<2x16x32xf32>
    %c0_162 = arith.constant 0 : index
    %c8_163 = arith.constant 8 : index
    %c0_164 = arith.constant 0 : index
    %239 = vector.load %arg5[%c0_162, %c8_163, %c0_164] : memref<2x30x32xf32, #tpu.memory_space<vmem>>, vector<2x16x32xf32>
    tpu.vector_store %arg5[%c0_162, %c8_163, %c0_164], %238 {strides = array<i32>} : memref<2x30x32xf32, #tpu.memory_space<vmem>>, vector<2x16x32xf32>,
    %c0_165 = arith.constant 0 : index
    %c6_166 = arith.constant 6 : index
    %c0_167 = arith.constant 0 : index
    %240 = vector.load %arg5[%c0_165, %c6_166, %c0_167] : memref<2x30x32xf32, #tpu.memory_space<vmem>>, vector<2x24x32xf32>
    %241 = vector.shape_cast %240 : vector<2x24x32xf32> to vector<48x32xf32>
    %c2_168 = arith.constant 2 : index
    %c0_169 = arith.constant 0 : index
    %c0_170 = arith.constant 0 : index
    %242 = vector.load %arg2[%c2_168, %c0_169, %c0_170] : memref<6x32x96xf32, #tpu.memory_space<vmem>>, vector<1x32x96xf32>
    %243 = vector.shape_cast %242 : vector<1x32x96xf32> to vector<32x96xf32>
    %cst_171 = arith.constant dense<0.000000e+00> : vector<48x96xf32>
    %244 = tpu.matmul %241, %243, %cst_171 {dimension_numbers = #tpu.dot_dimension_numbers<[1], [0], [0], [1], [0, 0, 1, 1], [], []>} : vector<48x32xf32>, vector<32x96xf32>, vector<48x96xf32> -> vector<48x96xf32>
    %245 = vector.shape_cast %244 : vector<48x96xf32> to vector<2x24x96xf32>
    %c2_172 = arith.constant 2 : index
    %c0_173 = arith.constant 0 : index
    %c0_174 = arith.constant 0 : index
    %246 = vector.load %arg3[%c2_172, %c0_173, %c0_174] : memref<6x1x32xf32, #tpu.memory_space<vmem>>, vector<1x1x32xf32>
    %247 = vector.shape_cast %246 : vector<1x1x32xf32> to vector<1x32xf32>
    %248 = vector.extract_strided_slice %245 {offsets = [0, 0, 0], sizes = [2, 16, 32], strides = [1, 1, 1]} : vector<2x24x96xf32> to vector<2x16x32xf32>
    %249 = vector.shape_cast %247 : vector<1x32xf32> to vector<1x1x32xf32>
    %250 = vector.broadcast %249 : vector<1x1x32xf32> to vector<2x16x32xf32>
    %251 = arith.addf %250, %248 : vector<2x16x32xf32>
    %252 = vector.extract_strided_slice %245 {offsets = [0, 2, 32], sizes = [2, 16, 32], strides = [1, 1, 1]} : vector<2x24x96xf32> to vector<2x16x32xf32>
    %253 = arith.addf %251, %252 : vector<2x16x32xf32>
    %254 = vector.extract_strided_slice %245 {offsets = [0, 4, 64], sizes = [2, 16, 32], strides = [1, 1, 1]} : vector<2x24x96xf32> to vector<2x16x32xf32>
    %255 = arith.addf %253, %254 : vector<2x16x32xf32>
    %cst_175 = arith.constant 0.000000e+00 : f32
    %256 = vector.broadcast %cst_175 : f32 to vector<2x16x32xf32>
    %257 = arith.cmpf oge, %255, %256 : vector<2x16x32xf32>
    %cst_176 = arith.constant 0.00999999977 : f32
    %258 = vector.broadcast %cst_176 : f32 to vector<2x16x32xf32>
    %259 = arith.mulf %258, %255 : vector<2x16x32xf32>
    %260 = arith.select %257, %255, %259 : vector<2x16x32xi1>, vector<2x16x32xf32>
    %c0_177 = arith.constant 0 : index
    %c8_178 = arith.constant 8 : index
    %c0_179 = arith.constant 0 : index
    %261 = vector.load %arg5[%c0_177, %c8_178, %c0_179] : memref<2x30x32xf32, #tpu.memory_space<vmem>>, vector<2x16x32xf32>
    tpu.vector_store %arg5[%c0_177, %c8_178, %c0_179], %260 {strides = array<i32>} : memref<2x30x32xf32, #tpu.memory_space<vmem>>, vector<2x16x32xf32>,
    %c0_180 = arith.constant 0 : index
    %c6_181 = arith.constant 6 : index
    %c0_182 = arith.constant 0 : index
    %262 = vector.load %arg5[%c0_180, %c6_181, %c0_182] : memref<2x30x32xf32, #tpu.memory_space<vmem>>, vector<2x24x32xf32>
    %263 = vector.shape_cast %262 : vector<2x24x32xf32> to vector<48x32xf32>
    %c3_183 = arith.constant 3 : index
    %c0_184 = arith.constant 0 : index
    %c0_185 = arith.constant 0 : index
    %264 = vector.load %arg2[%c3_183, %c0_184, %c0_185] : memref<6x32x96xf32, #tpu.memory_space<vmem>>, vector<1x32x96xf32>
    %265 = vector.shape_cast %264 : vector<1x32x96xf32> to vector<32x96xf32>
    %cst_186 = arith.constant dense<0.000000e+00> : vector<48x96xf32>
    %266 = tpu.matmul %263, %265, %cst_186 {dimension_numbers = #tpu.dot_dimension_numbers<[1], [0], [0], [1], [0, 0, 1, 1], [], []>} : vector<48x32xf32>, vector<32x96xf32>, vector<48x96xf32> -> vector<48x96xf32>
    %267 = vector.shape_cast %266 : vector<48x96xf32> to vector<2x24x96xf32>
    %c3_187 = arith.constant 3 : index
    %c0_188 = arith.constant 0 : index
    %c0_189 = arith.constant 0 : index
    %268 = vector.load %arg3[%c3_187, %c0_188, %c0_189] : memref<6x1x32xf32, #tpu.memory_space<vmem>>, vector<1x1x32xf32>
    %269 = vector.shape_cast %268 : vector<1x1x32xf32> to vector<1x32xf32>
    %270 = vector.extract_strided_slice %267 {offsets = [0, 0, 0], sizes = [2, 16, 32], strides = [1, 1, 1]} : vector<2x24x96xf32> to vector<2x16x32xf32>
    %271 = vector.shape_cast %269 : vector<1x32xf32> to vector<1x1x32xf32>
    %272 = vector.broadcast %271 : vector<1x1x32xf32> to vector<2x16x32xf32>
    %273 = arith.addf %272, %270 : vector<2x16x32xf32>
    %274 = vector.extract_strided_slice %267 {offsets = [0, 2, 32], sizes = [2, 16, 32], strides = [1, 1, 1]} : vector<2x24x96xf32> to vector<2x16x32xf32>
    %275 = arith.addf %273, %274 : vector<2x16x32xf32>
    %276 = vector.extract_strided_slice %267 {offsets = [0, 4, 64], sizes = [2, 16, 32], strides = [1, 1, 1]} : vector<2x24x96xf32> to vector<2x16x32xf32>
    %277 = arith.addf %275, %276 : vector<2x16x32xf32>
    %cst_190 = arith.constant 0.000000e+00 : f32
    %278 = vector.broadcast %cst_190 : f32 to vector<2x16x32xf32>
    %279 = arith.cmpf oge, %277, %278 : vector<2x16x32xf32>
    %cst_191 = arith.constant 0.00999999977 : f32
    %280 = vector.broadcast %cst_191 : f32 to vector<2x16x32xf32>
    %281 = arith.mulf %280, %277 : vector<2x16x32xf32>
    %282 = arith.select %279, %277, %281 : vector<2x16x32xi1>, vector<2x16x32xf32>
    %c0_192 = arith.constant 0 : index
    %c8_193 = arith.constant 8 : index
    %c0_194 = arith.constant 0 : index
    %283 = vector.load %arg5[%c0_192, %c8_193, %c0_194] : memref<2x30x32xf32, #tpu.memory_space<vmem>>, vector<2x16x32xf32>
    tpu.vector_store %arg5[%c0_192, %c8_193, %c0_194], %282 {strides = array<i32>} : memref<2x30x32xf32, #tpu.memory_space<vmem>>, vector<2x16x32xf32>,
    %c0_195 = arith.constant 0 : index
    %c6_196 = arith.constant 6 : index
    %c0_197 = arith.constant 0 : index
    %284 = vector.load %arg5[%c0_195, %c6_196, %c0_197] : memref<2x30x32xf32, #tpu.memory_space<vmem>>, vector<2x24x32xf32>
    %285 = vector.shape_cast %284 : vector<2x24x32xf32> to vector<48x32xf32>
    %c4_198 = arith.constant 4 : index
    %c0_199 = arith.constant 0 : index
    %c0_200 = arith.constant 0 : index
    %286 = vector.load %arg2[%c4_198, %c0_199, %c0_200] : memref<6x32x96xf32, #tpu.memory_space<vmem>>, vector<1x32x96xf32>
    %287 = vector.shape_cast %286 : vector<1x32x96xf32> to vector<32x96xf32>
    %cst_201 = arith.constant dense<0.000000e+00> : vector<48x96xf32>
    %288 = tpu.matmul %285, %287, %cst_201 {dimension_numbers = #tpu.dot_dimension_numbers<[1], [0], [0], [1], [0, 0, 1, 1], [], []>} : vector<48x32xf32>, vector<32x96xf32>, vector<48x96xf32> -> vector<48x96xf32>
    %289 = vector.shape_cast %288 : vector<48x96xf32> to vector<2x24x96xf32>
    %c4_202 = arith.constant 4 : index
    %c0_203 = arith.constant 0 : index
    %c0_204 = arith.constant 0 : index
    %290 = vector.load %arg3[%c4_202, %c0_203, %c0_204] : memref<6x1x32xf32, #tpu.memory_space<vmem>>, vector<1x1x32xf32>
    %291 = vector.shape_cast %290 : vector<1x1x32xf32> to vector<1x32xf32>
    %292 = vector.extract_strided_slice %289 {offsets = [0, 0, 0], sizes = [2, 16, 32], strides = [1, 1, 1]} : vector<2x24x96xf32> to vector<2x16x32xf32>
    %293 = vector.shape_cast %291 : vector<1x32xf32> to vector<1x1x32xf32>
    %294 = vector.broadcast %293 : vector<1x1x32xf32> to vector<2x16x32xf32>
    %295 = arith.addf %294, %292 : vector<2x16x32xf32>
    %296 = vector.extract_strided_slice %289 {offsets = [0, 2, 32], sizes = [2, 16, 32], strides = [1, 1, 1]} : vector<2x24x96xf32> to vector<2x16x32xf32>
    %297 = arith.addf %295, %296 : vector<2x16x32xf32>
    %298 = vector.extract_strided_slice %289 {offsets = [0, 4, 64], sizes = [2, 16, 32], strides = [1, 1, 1]} : vector<2x24x96xf32> to vector<2x16x32xf32>
    %299 = arith.addf %297, %298 : vector<2x16x32xf32>
    %cst_205 = arith.constant 0.000000e+00 : f32
    %300 = vector.broadcast %cst_205 : f32 to vector<2x16x32xf32>
    %301 = arith.cmpf oge, %299, %300 : vector<2x16x32xf32>
    %cst_206 = arith.constant 0.00999999977 : f32
    %302 = vector.broadcast %cst_206 : f32 to vector<2x16x32xf32>
    %303 = arith.mulf %302, %299 : vector<2x16x32xf32>
    %304 = arith.select %301, %299, %303 : vector<2x16x32xi1>, vector<2x16x32xf32>
    %c0_207 = arith.constant 0 : index
    %c8_208 = arith.constant 8 : index
    %c0_209 = arith.constant 0 : index
    %305 = vector.load %arg5[%c0_207, %c8_208, %c0_209] : memref<2x30x32xf32, #tpu.memory_space<vmem>>, vector<2x16x32xf32>
    tpu.vector_store %arg5[%c0_207, %c8_208, %c0_209], %304 {strides = array<i32>} : memref<2x30x32xf32, #tpu.memory_space<vmem>>, vector<2x16x32xf32>,
    %c0_210 = arith.constant 0 : index
    %c6_211 = arith.constant 6 : index
    %c0_212 = arith.constant 0 : index
    %306 = vector.load %arg5[%c0_210, %c6_211, %c0_212] : memref<2x30x32xf32, #tpu.memory_space<vmem>>, vector<2x24x32xf32>
    %307 = vector.shape_cast %306 : vector<2x24x32xf32> to vector<48x32xf32>
    %c5_213 = arith.constant 5 : index
    %c0_214 = arith.constant 0 : index
    %c0_215 = arith.constant 0 : index
    %308 = vector.load %arg2[%c5_213, %c0_214, %c0_215] : memref<6x32x96xf32, #tpu.memory_space<vmem>>, vector<1x32x96xf32>
    %309 = vector.shape_cast %308 : vector<1x32x96xf32> to vector<32x96xf32>
    %cst_216 = arith.constant dense<0.000000e+00> : vector<48x96xf32>
    %310 = tpu.matmul %307, %309, %cst_216 {dimension_numbers = #tpu.dot_dimension_numbers<[1], [0], [0], [1], [0, 0, 1, 1], [], []>} : vector<48x32xf32>, vector<32x96xf32>, vector<48x96xf32> -> vector<48x96xf32>
    %311 = vector.shape_cast %310 : vector<48x96xf32> to vector<2x24x96xf32>
    %c5_217 = arith.constant 5 : index
    %c0_218 = arith.constant 0 : index
    %c0_219 = arith.constant 0 : index
    %312 = vector.load %arg3[%c5_217, %c0_218, %c0_219] : memref<6x1x32xf32, #tpu.memory_space<vmem>>, vector<1x1x32xf32>
    %313 = vector.shape_cast %312 : vector<1x1x32xf32> to vector<1x32xf32>
    %314 = vector.extract_strided_slice %311 {offsets = [0, 0, 0], sizes = [2, 16, 32], strides = [1, 1, 1]} : vector<2x24x96xf32> to vector<2x16x32xf32>
    %315 = vector.shape_cast %313 : vector<1x32xf32> to vector<1x1x32xf32>
    %316 = vector.broadcast %315 : vector<1x1x32xf32> to vector<2x16x32xf32>
    %317 = arith.addf %316, %314 : vector<2x16x32xf32>
    %318 = vector.extract_strided_slice %311 {offsets = [0, 2, 32], sizes = [2, 16, 32], strides = [1, 1, 1]} : vector<2x24x96xf32> to vector<2x16x32xf32>
    %319 = arith.addf %317, %318 : vector<2x16x32xf32>
    %320 = vector.extract_strided_slice %311 {offsets = [0, 4, 64], sizes = [2, 16, 32], strides = [1, 1, 1]} : vector<2x24x96xf32> to vector<2x16x32xf32>
    %321 = arith.addf %319, %320 : vector<2x16x32xf32>
    %cst_220 = arith.constant 0.000000e+00 : f32
    %322 = vector.broadcast %cst_220 : f32 to vector<2x16x32xf32>
    %323 = arith.cmpf oge, %321, %322 : vector<2x16x32xf32>
    %cst_221 = arith.constant 0.00999999977 : f32
    %324 = vector.broadcast %cst_221 : f32 to vector<2x16x32xf32>
    %325 = arith.mulf %324, %321 : vector<2x16x32xf32>
    %326 = arith.select %323, %321, %325 : vector<2x16x32xi1>, vector<2x16x32xf32>
    %c0_222 = arith.constant 0 : index
    %c0_223 = arith.constant 0 : index
    %c0_224 = arith.constant 0 : index
    %327 = vector.load %arg4[%c0_222, %c0_223, %c0_224] : memref<2x16x32xf32, #tpu.memory_space<vmem>>, vector<2x16x32xf32>
    tpu.vector_store %arg4[%c0_222, %c0_223, %c0_224], %326 {strides = array<i32>} : memref<2x16x32xf32, #tpu.memory_space<vmem>>, vector<2x16x32xf32>,
    return
  }
}

</mosaic_0001>

<bundles_post_ra>
// kernel: conv_lm_forward.1
= control target key start
LH: loop header
LB: loop body
LE: loop exit
PB: predicated region body
PF: predicated region fallthrough
CT: control target
= control target key end

     0   :  { %9 = vsyncpa [#allocation6], 0  ;;  %s2161_s0 = inlined_call_operand.vmem [shape: s32[32], index: 0, kind: input, shape index: {}]   ;;  %s2162_s1 = inlined_call_operand.vmem [shape: f32[50,32], index: 1, kind: input, shape index: {}]   ;;  %s2163_s2 = inlined_call_operand.hbm [shape: f32[6,32,96], index: 2, kind: input, shape index: {}]   ;;  %s2164_s3 = inlined_call_operand.vmem [shape: f32[6,1,32], index: 3, kind: input, shape index: {}]   ;;  %s2165_s4 = inlined_call_operand.hbm [shape: f32[2,16,32], index: 4, kind: output, shape index: {}]  }
   0x1   :  { %10 = vsyncpa [#allocation4], 0 }
   0x2   :  { %11 = vsyncpa [#allocation5], 0  ;;  %s18_s17 = sshll.u32 %s2161_s0, 4  ;;  %s19_s17 = int_to_ptr.vmem [resolvable:$true] %s18_s17 }
   0x3   :  { %s1739_s18 = scalar_lea.vmem %s19_s17, 16  ;;  %p1744_p1 = scmp.lt.s32.totalorder %s19_s17, %s19_s17 }
   0x4   :  { %p1740_p0 = scmp.ne.s32.totalorder %s19_s17, %s1739_s18  ;;  %p1745_p2 = scmp.lt.s32.totalorder %s1739_s18, %s1739_s18 }
   0x6   :  { %p1746_p3 = por %p1745_p2, %p1744_p1 }
   0x8   :  { %p1747_p4 = pnand %p1746_p3, %p1740_p0 }
   0xa   :  { %1750 = shalt.err (!%p1747_p4)
}
   0xb   :  { %s1797_s19 = smov [#allocation3]   ;;  %s1798_s20 = smov [#allocation7]  }
   0xc   :  { %21 = dma.vmem_to_smem %s19_s17, 16, %s1797_s19, [#allocation6]  }
   0xd   :  { %s29_s21 = sshll.u32 %s1798_s20, 4  ;;  %s30_s21 = int_to_ptr.vmem [resolvable:$true] %s29_s21 }
   0xe   :  { %s1759_s22 = scalar_lea.vmem %s30_s21, 3072  ;;  %p1764_p6 = scmp.lt.s32.totalorder %s30_s21, %s30_s21 }
   0xf   :  { %p1760_p5 = scmp.ne.s32.totalorder %s30_s21, %s1759_s22  ;;  %p1765_p7 = scmp.lt.s32.totalorder %s1759_s22, %s1759_s22 }
  0x11   :  { %p1766_p8 = por %p1765_p7, %p1764_p6 }
  0x13   :  { %p1767_p9 = pnand %p1766_p8, %p1760_p5 }
  0x15   :  { %1770 = shalt.err (!%p1767_p9)
}
  0x16   :  { %s1799_s0 = smov 128   ;;  %s1800_s23 = smov 8  }
  0x17   :  { %35 = dma.hbm_to_vmem [thread:$0]  %s2163_s2, 3072, %s30_s21, [#allocation4], %s1799_s0, %s1799_s0, %s1800_s23  }
  0x18   :  { %1791 = dma.done.wait [#allocation6], 16  }
  0x19   :  { %1792 = vsyncadd [#allocation6], 4294967280 }
  0x1a   :  { %1793 = dma.done.wait [#allocation4], 3072  }
  0x1b   :  { %1794 = vsyncadd [#allocation4], 4294964224 }
  0x1c   :  { %44 = sfence }
  0x1d   :  { %v190_v0 = vld [vmem:[#allocation7 + $0x18] sm:$0xff]  ;;  %v189_v1 = vld [vmem:[#allocation7 + $0x10] sm:$0xff]  ;;  %vm45_vm0 = vcmask 261120   ;;  %v1801_v2 = vmov 0.0   ;;  %s51_s26 = sld [smem:[#allocation3]]  ;;  %vm48_vm1 = vcmask 259072  }
  0x1e   :  { %1629 = vmatprep.subr.mxu0 %v190_v0  ;;  %46 = vst.msk [vmem:[#allocation2] sm:$0xff] %vm45_vm0, %v1801_v2  ;;  %47 = vst.msk [vmem:[#allocation2 + $0x20] sm:$0xff] %vm45_vm0, %v1801_v2  ;;  %v188_v3 = vld [vmem:[#allocation7 + $0x8] sm:$0xff]  ;;  %s1491_s27 = sld [smem:[#allocation3 + $0x2]]  ;;  %v187_v4 = vld [vmem:[#allocation7] sm:$0xff]  ;;  %vm54_vm2 = vcmask 253952  }
  0x1f   :  { %1630 = vmatpush3.msra.mxu0 %v190_v0  ;;  %49 = vst.msk [vmem:[#allocation2 + $0x18] sm:$0x3f] %vm48_vm1, %v1801_v2  ;;  %50 = vst.msk [vmem:[#allocation2 + $0x38] sm:$0x3f] %vm48_vm1, %v1801_v2  ;;  %s1492_s2 = sld [smem:[#allocation3 + $0x4]]  ;;  %vm348_vm3 = vcmask 1043456  }
  0x20   :  { %1631 = vmatprep.subr.mxu0 %v189_v1  ;;  %s1493_s28 = sld [smem:[#allocation3 + $0x6]]  ;;  %vm321_vm4 = vcmask 1045504   ;;  %v401_v57 = vld [vmem:[#allocation7 + $0x38] sm:$0xff]  ;;  %v400_v58 = vld [vmem:[#allocation7 + $0x30] sm:$0xff]  ;;  %v399_v59 = vld [vmem:[#allocation7 + $0x28] sm:$0xff] }
  0x21   :  { %1632 = vmatpush3.msra.mxu0 %v189_v1  ;;  %s1494_s29 = sld [smem:[#allocation3 + $0x8]]  ;;  %1646 = vmatprep.subr.mxu1 %v401_v57  ;;  %v398_v61 = vld [vmem:[#allocation7 + $0x20] sm:$0xff] }
  0x22   :  { %1633 = vmatprep.subr.mxu0 %v188_v3  ;;  %s1495_s30 = sld [smem:[#allocation3 + $0xa]]  ;;  %1647 = vmatpush3.msra.mxu1 %v401_v57 }
  0x23   :  { %1634 = vmatpush3.msra.mxu0 %v188_v3  ;;  %s52_s7 = scalar_lea.vmem %s2162_s1, %s51_s26  ;;  %s1496_s8 = sld [smem:[#allocation3 + $0xc]]  ;;  %1648 = vmatprep.subr.mxu1 %v400_v58 }
  0x24   :  { %1635 = vmatprep.subr.mxu0 %v187_v4  ;;  %v53_v5 = vld [vmem:[%s52_s7] sm:$0x1]  ;;  %s57_s11 = scalar_lea.vmem %s2162_s1, %s1491_s27  ;;  %s1497_s12 = sld [smem:[#allocation3 + $0xe]]  ;;  %1649 = vmatpush3.msra.mxu1 %v400_v58 }
  0x25   :  { %1636 = vmatpush3.msra.mxu0 %v187_v4  ;;  %55 = vst.msk [vmem:[#allocation2 + $0x8] sm:$0x1] %vm54_vm2, %v53_v5  ;;  %v58_v6 = vld [vmem:[%s57_s11] sm:$0x1]  ;;  %s61_s15 = scalar_lea.vmem %s2162_s1, %s1492_s2  ;;  %s1498_s16 = sld [smem:[#allocation3 + $0x10]]  ;;  %1650 = vmatprep.subr.mxu1 %v399_v59 }
  0x26   :  { %59 = vst.msk [vmem:[#allocation2 + $0x9] sm:$0x1] %vm54_vm2, %v58_v6  ;;  %v62_v7 = vld [vmem:[%s61_s15] sm:$0x1]  ;;  %s65_s19 = scalar_lea.vmem %s2162_s1, %s1493_s28  ;;  %s1499_s20 = sld [smem:[#allocation3 + $0x12]]  ;;  %1651 = vmatpush3.msra.mxu1 %v399_v59 }
  0x27   :  { %63 = vst.msk [vmem:[#allocation2 + $0xa] sm:$0x1] %vm54_vm2, %v62_v7  ;;  %v66_v8 = vld [vmem:[%s65_s19] sm:$0x1]  ;;  %s69_s24 = scalar_lea.vmem %s2162_s1, %s1494_s29  ;;  %s1500_s25 = sld [smem:[#allocation3 + $0x14]]  ;;  %1652 = vmatprep.subr.mxu1 %v398_v61 }
  0x28   :  { %67 = vst.msk [vmem:[#allocation2 + $0xb] sm:$0x1] %vm54_vm2, %v66_v8  ;;  %v70_v9 = vld [vmem:[%s69_s24] sm:$0x1]  ;;  %s73_s2 = scalar_lea.vmem %s2162_s1, %s1495_s30  ;;  %s1501_s5 = sld [smem:[#allocation3 + $0x16]]  ;;  %1653 = vmatpush3.msra.mxu1 %v398_v61 }
  0x29   :  { %71 = vst.msk [vmem:[#allocation2 + $0xc] sm:$0x1] %vm54_vm2, %v70_v9  ;;  %v74_v10 = vld [vmem:[%s73_s2] sm:$0x1]  ;;  %s77_s7 = scalar_lea.vmem %s2162_s1, %s1496_s8  ;;  %s1502_s9 = sld [smem:[#allocation3 + $0x18]] }
  0x2a   :  { %75 = vst.msk [vmem:[#allocation2 + $0xd] sm:$0x1] %vm54_vm2, %v74_v10  ;;  %v78_v11 = vld [vmem:[%s77_s7] sm:$0x1]  ;;  %s81_s11 = scalar_lea.vmem %s2162_s1, %s1497_s12  ;;  %s1503_s13 = sld [smem:[#allocation3 + $0x1a]] }
  0x2b   :  { %79 = vst.msk [vmem:[#allocation2 + $0xe] sm:$0x1] %vm54_vm2, %v78_v11  ;;  %v82_v12 = vld [vmem:[%s81_s11] sm:$0x1]  ;;  %s85_s15 = scalar_lea.vmem %s2162_s1, %s1498_s16  ;;  %s1504_s17 = sld [smem:[#allocation3 + $0x1c]] }
  0x2c   :  { %83 = vst.msk [vmem:[#allocation2 + $0xf] sm:$0x1] %vm54_vm2, %v82_v12  ;;  %v86_v13 = vld [vmem:[%s85_s15] sm:$0x1]  ;;  %s89_s19 = scalar_lea.vmem %s2162_s1, %s1499_s20  ;;  %s1505_s21 = sld [smem:[#allocation3 + $0x1e]] }
  0x2d   :  { %87 = vst.msk [vmem:[#allocation2 + $0x10] sm:$0x1] %vm54_vm2, %v86_v13  ;;  %v90_v14 = vld [vmem:[%s89_s19] sm:$0x1]  ;;  %s93_s24 = scalar_lea.vmem %s2162_s1, %s1500_s25  ;;  %s1506_s26 = sld [smem:[#allocation3 + $0x1]] }
  0x2e   :  { %91 = vst.msk [vmem:[#allocation2 + $0x11] sm:$0x1] %vm54_vm2, %v90_v14  ;;  %v94_v15 = vld [vmem:[%s93_s24] sm:$0x1]  ;;  %s97_s2 = scalar_lea.vmem %s2162_s1, %s1501_s5  ;;  %s1507_s28 = sld [smem:[#allocation3 + $0x3]] }
  0x2f   :  { %95 = vst.msk [vmem:[#allocation2 + $0x12] sm:$0x1] %vm54_vm2, %v94_v15  ;;  %v98_v16 = vld [vmem:[%s97_s2] sm:$0x1]  ;;  %s101_s7 = scalar_lea.vmem %s2162_s1, %s1502_s9  ;;  %s1508_s29 = sld [smem:[#allocation3 + $0x5]] }
  0x30   :  { %99 = vst.msk [vmem:[#allocation2 + $0x13] sm:$0x1] %vm54_vm2, %v98_v16  ;;  %v102_v17 = vld [vmem:[%s101_s7] sm:$0x1]  ;;  %s105_s11 = scalar_lea.vmem %s2162_s1, %s1503_s13  ;;  %s1509_s30 = sld [smem:[#allocation3 + $0x7]] }
  0x31   :  { %v181_v18 = vld [vmem:[#allocation2 + $0x6] sm:$0xff]  ;;  %103 = vst.msk [vmem:[#allocation2 + $0x14] sm:$0x1] %vm54_vm2, %v102_v17  ;;  %v106_v19 = vld [vmem:[%s105_s11] sm:$0x1]  ;;  %s109_s15 = scalar_lea.vmem %s2162_s1, %s1504_s17  ;;  %s1510_s8 = sld [smem:[#allocation3 + $0x9]] }
  0x32   :  { %1637 = vmatprep.mubr.msk.f32.mxu0 %vm45_vm0, %v181_v18  ;;  %107 = vst.msk [vmem:[#allocation2 + $0x15] sm:$0x1] %vm54_vm2, %v106_v19  ;;  %v110_v20 = vld [vmem:[%s109_s15] sm:$0x1]  ;;  %s113_s19 = scalar_lea.vmem %s2162_s1, %s1505_s21  ;;  %s1511_s13 = sld [smem:[#allocation3 + $0xb]] }
  0x33   :  { %111 = vst.msk [vmem:[#allocation2 + $0x16] sm:$0x1] %vm54_vm2, %v110_v20  ;;  %v114_v21 = vld [vmem:[%s113_s19] sm:$0x1]  ;;  %s117_s24 = scalar_lea.vmem %s2162_s1, %s1506_s26  ;;  %s1512_s16 = sld [smem:[#allocation3 + $0xd]] }
  0x34   :  { %115 = vst.msk [vmem:[#allocation2 + $0x17] sm:$0x1] %vm54_vm2, %v114_v21  ;;  %v118_v22 = vld [vmem:[%s117_s24] sm:$0x1]  ;;  %s122_s2 = scalar_lea.vmem %s2162_s1, %s1507_s28  ;;  %s1912_s20 = sld [smem:[#allocation3 + $0xf]] }
  0x35   :  { %120 = vst.msk [vmem:[#allocation2 + $0x28] sm:$0x1] %vm54_vm2, %v118_v22  ;;  %v123_v23 = vld [vmem:[%s122_s2] sm:$0x1]  ;;  %s126_s7 = scalar_lea.vmem %s2162_s1, %s1508_s29  ;;  %s1918_s25 = sld [smem:[#allocation3 + $0x11]] }
  0x36   :  { %124 = vst.msk [vmem:[#allocation2 + $0x29] sm:$0x1] %vm54_vm2, %v123_v23  ;;  %v127_v24 = vld [vmem:[%s126_s7] sm:$0x1]  ;;  %s130_s11 = scalar_lea.vmem %s2162_s1, %s1509_s30  ;;  %s1924_s5 = sld [smem:[#allocation3 + $0x13]] }
  0x37   :  { %128 = vst.msk [vmem:[#allocation2 + $0x2a] sm:$0x1] %vm54_vm2, %v127_v24  ;;  %v131_v25 = vld [vmem:[%s130_s11] sm:$0x1]  ;;  %s134_s15 = scalar_lea.vmem %s2162_s1, %s1510_s8  ;;  %s1930_s29 = sld [smem:[#allocation3 + $0x15]] }
  0x38   :  { %132 = vst.msk [vmem:[#allocation2 + $0x2b] sm:$0x1] %vm54_vm2, %v131_v25  ;;  %v135_v26 = vld [vmem:[%s134_s15] sm:$0x1]  ;;  %s138_s30 = scalar_lea.vmem %s2162_s1, %s1511_s13  ;;  %s1517_s19 = sld [smem:[#allocation3 + $0x17]] }
  0x39   :  { %v182_v27 = vld [vmem:[#allocation2 + $0xe] sm:$0xff]  ;;  %136 = vst.msk [vmem:[#allocation2 + $0x2c] sm:$0x1] %vm54_vm2, %v135_v26  ;;  %v139_v28 = vld [vmem:[%s138_s30] sm:$0x1]  ;;  %s142_s8 = scalar_lea.vmem %s2162_s1, %s1512_s16  ;;  %s1518_s24 = sld [smem:[#allocation3 + $0x19]] }
  0x3a   :  { %1638 = vmatmul.mubr.msk.f32.vlgmr.msra.gmra.mxu0 %vm45_vm0, %v182_v27  ;;  %140 = vst.msk [vmem:[#allocation2 + $0x2d] sm:$0x1] %vm54_vm2, %v139_v28  ;;  %v143_v29 = vld [vmem:[%s142_s8] sm:$0x1]  ;;  %s146_s13 = scalar_lea.vmem %s2162_s1, %s1912_s20  ;;  %s1519_s2 = sld [smem:[#allocation3 + $0x1b]] }
  0x3b   :  { %v183_v30 = vld [vmem:[#allocation2 + $0x16] sm:$0xff]  ;;  %144 = vst.msk [vmem:[#allocation2 + $0x2e] sm:$0x1] %vm54_vm2, %v143_v29  ;;  %v147_v31 = vld [vmem:[%s146_s13] sm:$0x1]  ;;  %s150_s16 = scalar_lea.vmem %s2162_s1, %s1918_s25  ;;  %s1520_s7 = sld [smem:[#allocation3 + $0x1d]] }
  0x3c   :  { %1640 = vmatprep.mubr.msk.f32.mxu0 %vm45_vm0, %v183_v30  ;;  %148 = vst.msk [vmem:[#allocation2 + $0x2f] sm:$0x1] %vm54_vm2, %v147_v31  ;;  %v151_v32 = vld [vmem:[%s150_s16] sm:$0x1]  ;;  %s154_s11 = scalar_lea.vmem %s2162_s1, %s1924_s5  ;;  %s1521_s20 = sld [smem:[#allocation3 + $0x1f]] }
  0x3d   :  { %152 = vst.msk [vmem:[#allocation2 + $0x30] sm:$0x1] %vm54_vm2, %v151_v32  ;;  %v155_v33 = vld [vmem:[%s154_s11] sm:$0x1]  ;;  %s158_s15 = scalar_lea.vmem %s2162_s1, %s1930_s29 }
  0x3e   :  { %156 = vst.msk [vmem:[#allocation2 + $0x31] sm:$0x1] %vm54_vm2, %v155_v33  ;;  %v159_v34 = vld [vmem:[%s158_s15] sm:$0x1]  ;;  %s162_s18 = scalar_lea.vmem %s2162_s1, %s1517_s19 }
  0x3f   :  { %160 = vst.msk [vmem:[#allocation2 + $0x32] sm:$0x1] %vm54_vm2, %v159_v34  ;;  %v163_v35 = vld [vmem:[%s162_s18] sm:$0x1]  ;;  %s166_s12 = scalar_lea.vmem %s2162_s1, %s1518_s24 }
  0x40   :  { %164 = vst.msk [vmem:[#allocation2 + $0x33] sm:$0x1] %vm54_vm2, %v163_v35  ;;  %v167_v36 = vld [vmem:[%s166_s12] sm:$0x1]  ;;  %s170_s29 = scalar_lea.vmem %s2162_s1, %s1519_s2  ;;  %s1803_s2 = smov 96  }
  0x41   :  { %v184_v37 = vld [vmem:[#allocation2 + $0x26] sm:$0xff]  ;;  %168 = vst.msk [vmem:[#allocation2 + $0x34] sm:$0x1] %vm54_vm2, %v167_v36  ;;  %v171_v38 = vld [vmem:[%s170_s29] sm:$0x1]  ;;  %s174_s27 = scalar_lea.vmem %s2162_s1, %s1520_s7 }
  0x42   :  { %1641 = vmatmul.mubr.msk.f32.gmra.mxu0 %vm45_vm0, %v184_v37  ;;  %172 = vst.msk [vmem:[#allocation2 + $0x35] sm:$0x1] %vm54_vm2, %v171_v38  ;;  %v175_v39 = vld [vmem:[%s174_s27] sm:$0x1]  ;;  %s178_s21 = scalar_lea.vmem %s2162_s1, %s1521_s20  ;;  %s1802_s1 = smov 64  }
  0x43   :  { %176 = vst.msk [vmem:[#allocation2 + $0x36] sm:$0x1] %vm54_vm2, %v175_v39  ;;  %v179_v40 = vld [vmem:[%s178_s21] sm:$0x1] }
  0x44   :  { %180 = vst.msk [vmem:[#allocation2 + $0x37] sm:$0x1] %vm54_vm2, %v179_v40  ;;  %v1528_v9 = vld [vmem:[%s2164_s3] ss:$0 sm:$0xff] }
  0x49   :  { %v185_v41 = vld [vmem:[#allocation2 + $0x2e] sm:$0xff] }
  0x4a   :  { %1643 = vmatprep.mubr.msk.f32.mxu0 %vm45_vm0, %v185_v41 }
  0x4b   :  { %v186_v42 = vld [vmem:[#allocation2 + $0x36] sm:$0xff] }
  0x4c   :  { %1644 = vmatmul.mubr.msk.f32.gmra.mxu0 %vm45_vm0, %v186_v42 }
  0xfa   :  { %v1639_v43 = vpop.f32.mrf.mxu0 }
  0xfb   :  { %v323_v45 = vrot.slane %v1639_v43, 2  ;;  %v350_v46 = vrot.slane %v1639_v43, 4  ;;  %v312_v17 = vadd.f32 %v1639_v43, %v1528_v9 }
  0xfc   :  { %v275_v44 = vpop.f32.mrf.mxu0 }
  0xfd   :  { %v322_v47 = vrot.slane %v275_v44, 2  ;;  %v349_v48 = vrot.slane %v275_v44, 4  ;;  %v311_v10 = vadd.f32 %v1528_v9, %v275_v44 }
  0xff   :  { %v351_v49 = vsel %vm348_vm3, %v349_v48, %v350_v46  ;;  %v324_v50 = vsel %vm321_vm4, %v322_v47, %v323_v45 }
 0x100   :  { %359 = vrot.lane.b32.xlu1 %v351_v49, %s1802_s1  ;;  %332 = vrot.lane.b32.xlu0 %v324_v50, %s1803_s2 }
 0x102   :  { %v1642_v51 = vpop.f32.mrf.mxu0 }
 0x103   :  { %v327_v63 = vrot.slane %v1642_v51, 2  ;;  %v354_v0 = vrot.slane %v1642_v51, 4  ;;  %v313_v25 = vadd.f32 %v1642_v51, %v1528_v9 }
 0x104   :  { %v285_v52 = vpop.f32.mrf.mxu0 }
 0x105   :  { %v325_v53 = vrot.slane %v285_v52, 2  ;;  %v352_v54 = vrot.slane %v285_v52, 4 }
 0x107   :  { %v353_v55 = vsel %vm348_vm3, %v350_v46, %v352_v54  ;;  %v326_v56 = vsel %vm321_vm4, %v323_v45, %v325_v53  ;;  %v611_v53 = vld [vmem:[#allocation7 + $0x58] sm:$0xff] }
 0x108   :  { %361 = vrot.lane.b32.xlu1 %v353_v55, %s1802_s1  ;;  %334 = vrot.lane.b32.xlu0 %v326_v56, %s1803_s2  ;;  %v610_v55 = vld [vmem:[#allocation7 + $0x50] sm:$0xff] }
 0x109   :  { %1663 = vmatprep.subr.mxu0 %v611_v53 }
 0x10a   :  { %1664 = vmatpush3.msra.mxu0 %v611_v53 }
 0x10b   :  { %1665 = vmatprep.subr.mxu0 %v610_v55 }
 0x10c   :  { %v1645_v60 = vpop.f32.mrf.mxu0  ;;  %1666 = vmatpush3.msra.mxu0 %v610_v55 }
 0x10d   :  { %v330_v5 = vrot.slane %v1645_v60, 2  ;;  %v357_v6 = vrot.slane %v1645_v60, 4  ;;  %v609_v60 = vld [vmem:[#allocation7 + $0x48] sm:$0xff] }
 0x10e   :  { %v295_v62 = vpop.f32.mrf.mxu0  ;;  %1667 = vmatprep.subr.mxu0 %v609_v60 }
 0x10f   :  { %v328_v1 = vrot.slane %v295_v62, 2  ;;  %v355_v2 = vrot.slane %v295_v62, 4  ;;  %v314_v30 = vadd.f32 %v1528_v9, %v295_v62  ;;  %1668 = vmatpush3.msra.mxu0 %v609_v60  ;;  %v608_v62 = vld [vmem:[#allocation7 + $0x40] sm:$0xff] }
 0x110   :  { %1669 = vmatprep.subr.mxu0 %v608_v62 }
 0x111   :  { %v356_v3 = vsel %vm348_vm3, %v354_v0, %v355_v2  ;;  %v329_v4 = vsel %vm321_vm4, %v327_v63, %v328_v1  ;;  %v358_v7 = vsel %vm348_vm3, %v355_v2, %v357_v6  ;;  %v331_v8 = vsel %vm321_vm4, %v328_v1, %v330_v5  ;;  %1670 = vmatpush3.msra.mxu0 %v608_v62 }
 0x112   :  { %363 = vrot.lane.b32.xlu1 %v356_v3, %s1802_s1  ;;  %336 = vrot.lane.b32.xlu0 %v329_v4, %s1803_s2 }
 0x116   :  { %365 = vrot.lane.b32.xlu1 %v358_v7, %s1802_s1  ;;  %338 = vrot.lane.b32.xlu0 %v331_v8, %s1803_s2 }
 0x172   :  { %v333_v11 = vpop.permute.xlu0 %332  ;;  %v360_v13 = vpop.permute.xlu1 %359 }
 0x173   :  { %v344_v12 = vadd.f32 %v333_v11, %v311_v10  ;;  %v1536_v10 = vld [vmem:[%s2164_s3 + $0x1] ss:$0 sm:$0xff] }
 0x175   :  { %v371_v14 = vadd.f32 %v360_v13, %v344_v12 }
 0x177   :  { %vm375_vm5 = vcmp.ge.f32.partialorder %v371_v14, 0.0  ;;  %v379_v15 = vmul.f32 0.01, %v371_v14 }
 0x179   :  { %v383_v16 = vsel %vm375_vm5, %v371_v14, %v379_v15 }
 0x17a   :  { %387 = vst.msk [vmem:[#allocation2 + $0x8] sm:$0xff] %vm45_vm0, %v383_v16  ;;  %v335_v18 = vpop.permute.xlu0 %334  ;;  %v362_v20 = vpop.permute.xlu1 %361 }
 0x17b   :  { %v345_v19 = vadd.f32 %v335_v18, %v312_v17 }
 0x17d   :  { %v372_v21 = vadd.f32 %v362_v20, %v345_v19 }
 0x17f   :  { %vm376_vm6 = vcmp.ge.f32.partialorder %v372_v21, 0.0  ;;  %v380_v22 = vmul.f32 0.01, %v372_v21 }
 0x181   :  { %v384_v23 = vsel %vm376_vm6, %v372_v21, %v380_v22  ;;  %v391_v24 = vld [vmem:[#allocation2 + $0x6] sm:$0xff] }
 0x182   :  { %388 = vst.msk [vmem:[#allocation2 + $0x10] sm:$0xff] %vm45_vm0, %v384_v23  ;;  %1654 = vmatprep.mubr.msk.f32.mxu1 %vm45_vm0, %v391_v24 }
 0x184   :  { %v364_v26 = vpop.permute.xlu1 %363  ;;  %v337_v27 = vpop.permute.xlu0 %336 }
 0x185   :  { %v346_v28 = vadd.f32 %v337_v27, %v313_v25 }
 0x187   :  { %v373_v29 = vadd.f32 %v364_v26, %v346_v28 }
 0x188   :  { %v339_v31 = vpop.permute.xlu0 %338  ;;  %v366_v36 = vpop.permute.xlu1 %365 }
 0x189   :  { %vm377_vm7 = vcmp.ge.f32.partialorder %v373_v29, 0.0  ;;  %v381_v32 = vmul.f32 0.01, %v373_v29  ;;  %v347_v33 = vadd.f32 %v339_v31, %v314_v30  ;;  %v392_v34 = vld [vmem:[#allocation2 + $0xe] sm:$0xff]  ;;  %v393_v35 = vld [vmem:[#allocation2 + $0x16] sm:$0xff] }
 0x18a   :  { %1655 = vmatmul.mubr.msk.f32.vlgmr.msra.gmra.mxu1 %vm45_vm0, %v392_v34 }
 0x18b   :  { %v385_v37 = vsel %vm377_vm7, %v373_v29, %v381_v32  ;;  %v374_v38 = vadd.f32 %v366_v36, %v347_v33  ;;  %1657 = vmatprep.mubr.msk.f32.mxu1 %vm45_vm0, %v393_v35 }
 0x18c   :  { %389 = vst.msk [vmem:[#allocation2 + $0x28] sm:$0xff] %vm45_vm0, %v385_v37 }
 0x18d   :  { %vm378_vm8 = vcmp.ge.f32.partialorder %v374_v38, 0.0  ;;  %v382_v39 = vmul.f32 0.01, %v374_v38 }
 0x18f   :  { %v386_v40 = vsel %vm378_vm8, %v374_v38, %v382_v39 }
 0x190   :  { %390 = vst.msk [vmem:[#allocation2 + $0x30] sm:$0xff] %vm45_vm0, %v386_v40 }
 0x193   :  { %v394_v41 = vld [vmem:[#allocation2 + $0x26] sm:$0xff] }
 0x194   :  { %1658 = vmatmul.mubr.msk.f32.gmra.mxu1 %vm45_vm0, %v394_v41 }
 0x197   :  { %v395_v42 = vld [vmem:[#allocation2 + $0x2e] sm:$0xff]  ;;  %v396_v43 = vld [vmem:[#allocation2 + $0x36] sm:$0xff] }
 0x198   :  { %1660 = vmatprep.mubr.msk.f32.mxu1 %vm45_vm0, %v395_v42 }
 0x199   :  { %1661 = vmatmul.mubr.msk.f32.gmra.mxu1 %vm45_vm0, %v396_v43 }
 0x24a   :  { %v1656_v44 = vpop.f32.mrf.mxu1 }
 0x24b   :  { %v534_v46 = vrot.slane %v1656_v44, 2  ;;  %v560_v50 = vrot.slane %v1656_v44, 4  ;;  %v524_v19 = vadd.f32 %v1656_v44, %v1536_v10 }
 0x24c   :  { %v486_v45 = vpop.f32.mrf.mxu1 }
 0x24d   :  { %v533_v47 = vrot.slane %v486_v45, 2  ;;  %v559_v48 = vrot.slane %v486_v45, 4  ;;  %v523_v12 = vadd.f32 %v1536_v10, %v486_v45 }
 0x24f   :  { %v535_v49 = vsel %vm321_vm4, %v533_v47, %v534_v46  ;;  %v561_v51 = vsel %vm348_vm3, %v559_v48, %v560_v50 }
 0x250   :  { %543 = vrot.lane.b32.xlu0 %v535_v49, %s1803_s2 }
 0x254   :  { %v1659_v52 = vpop.f32.mrf.mxu1  ;;  %569 = vrot.lane.b32.xlu0 %v561_v51, %s1802_s1 }
 0x255   :  { %v538_v63 = vrot.slane %v1659_v52, 2  ;;  %v564_v4 = vrot.slane %v1659_v52, 4  ;;  %v525_v22 = vadd.f32 %v1659_v52, %v1536_v10  ;;  %v821_v52 = vld [vmem:[#allocation7 + $0x78] sm:$0xff] }
 0x256   :  { %v496_v54 = vpop.f32.mrf.mxu1  ;;  %1680 = vmatprep.subr.mxu1 %v821_v52 }
 0x257   :  { %v536_v56 = vrot.slane %v496_v54, 2  ;;  %v562_v57 = vrot.slane %v496_v54, 4  ;;  %v820_v54 = vld [vmem:[#allocation7 + $0x70] sm:$0xff]  ;;  %1681 = vmatpush3.msra.mxu1 %v821_v52 }
 0x258   :  { %1682 = vmatprep.subr.mxu1 %v820_v54 }
 0x259   :  { %v1662_v58 = vpop.f32.mrf.mxu1  ;;  %v537_v59 = vsel %vm321_vm4, %v534_v46, %v536_v56  ;;  %v563_v2 = vsel %vm348_vm3, %v560_v50, %v562_v57  ;;  %1683 = vmatpush3.msra.mxu1 %v820_v54  ;;  %v1031_v54 = vld [vmem:[#allocation7 + $0x98] sm:$0xff] }
 0x25a   :  { %545 = vrot.lane.b32.xlu1 %v537_v59, %s1803_s2  ;;  %v541_v5 = vrot.slane %v1662_v58, 2  ;;  %v567_v8 = vrot.slane %v1662_v58, 4  ;;  %1697 = vmatprep.subr.mxu0 %v1031_v54 }
 0x25b   :  { %v506_v61 = vpop.f32.mrf.mxu1 }
 0x25c   :  { %v539_v0 = vrot.slane %v506_v61, 2  ;;  %v565_v1 = vrot.slane %v506_v61, 4  ;;  %v526_v29 = vadd.f32 %v1536_v10, %v506_v61  ;;  %v819_v61 = vld [vmem:[#allocation7 + $0x68] sm:$0xff] }
 0x25d   :  { %1684 = vmatprep.subr.mxu1 %v819_v61 }
 0x25e   :  { %571 = vrot.lane.b32.xlu1 %v563_v2, %s1802_s1  ;;  %v540_v3 = vsel %vm321_vm4, %v538_v63, %v539_v0  ;;  %v566_v6 = vsel %vm348_vm3, %v564_v4, %v565_v1  ;;  %v542_v7 = vsel %vm321_vm4, %v539_v0, %v541_v5  ;;  %v568_v9 = vsel %vm348_vm3, %v565_v1, %v567_v8  ;;  %v818_v1 = vld [vmem:[#allocation7 + $0x60] sm:$0xff] }
 0x25f   :  { %547 = vrot.lane.b32.xlu0 %v540_v3, %s1803_s2  ;;  %1685 = vmatpush3.msra.mxu1 %v819_v61 }
 0x260   :  { %1686 = vmatprep.subr.mxu1 %v818_v1 }
 0x261   :  { %1687 = vmatpush3.msra.mxu1 %v818_v1 }
 0x262   :  { %573 = vrot.lane.b32.xlu1 %v566_v6, %s1802_s1 }
 0x263   :  { %549 = vrot.lane.b32.xlu0 %v542_v7, %s1803_s2 }
 0x266   :  { %575 = vrot.lane.b32.xlu1 %v568_v9, %s1802_s1 }
 0x2c2   :  { %v544_v11 = vpop.permute.xlu0 %543 }
 0x2c3   :  { %v555_v13 = vadd.f32 %v544_v11, %v523_v12  ;;  %v1544_v11 = vld [vmem:[%s2164_s3 + $0x2] ss:$0 sm:$0xff] }
 0x2c6   :  { %v570_v14 = vpop.permute.xlu0 %569 }
 0x2c7   :  { %v581_v15 = vadd.f32 %v570_v14, %v555_v13 }
 0x2c9   :  { %vm585_vm9 = vcmp.ge.f32.partialorder %v581_v15, 0.0  ;;  %v589_v16 = vmul.f32 0.01, %v581_v15 }
 0x2cb   :  { %v593_v17 = vsel %vm585_vm9, %v581_v15, %v589_v16 }
 0x2cc   :  { %v546_v18 = vpop.permute.xlu1 %545  ;;  %597 = vst.msk [vmem:[#allocation2 + $0x8] sm:$0xff] %vm45_vm0, %v593_v17 }
 0x2cd   :  { %v556_v20 = vadd.f32 %v546_v18, %v524_v19 }
 0x2d0   :  { %v572_v21 = vpop.permute.xlu1 %571 }
 0x2d1   :  { %v582_v23 = vadd.f32 %v572_v21, %v556_v20  ;;  %v548_v24 = vpop.permute.xlu0 %547 }
 0x2d2   :  { %v557_v25 = vadd.f32 %v548_v24, %v525_v22 }
 0x2d3   :  { %vm586_vm10 = vcmp.ge.f32.partialorder %v582_v23, 0.0  ;;  %v590_v26 = vmul.f32 0.01, %v582_v23  ;;  %v601_v27 = vld [vmem:[#allocation2 + $0x6] sm:$0xff] }
 0x2d4   :  { %v574_v28 = vpop.permute.xlu1 %573  ;;  %1671 = vmatprep.mubr.msk.f32.mxu0 %vm45_vm0, %v601_v27 }
 0x2d5   :  { %v594_v30 = vsel %vm586_vm10, %v582_v23, %v590_v26  ;;  %v583_v31 = vadd.f32 %v574_v28, %v557_v25  ;;  %v550_v32 = vpop.permute.xlu0 %549 }
 0x2d6   :  { %598 = vst.msk [vmem:[#allocation2 + $0x10] sm:$0xff] %vm45_vm0, %v594_v30  ;;  %v558_v33 = vadd.f32 %v550_v32, %v526_v29 }
 0x2d7   :  { %vm587_vm11 = vcmp.ge.f32.partialorder %v583_v31, 0.0  ;;  %v591_v34 = vmul.f32 0.01, %v583_v31 }
 0x2d8   :  { %v576_v35 = vpop.permute.xlu1 %575 }
 0x2d9   :  { %v595_v36 = vsel %vm587_vm11, %v583_v31, %v591_v34  ;;  %v584_v37 = vadd.f32 %v576_v35, %v558_v33 }
 0x2da   :  { %599 = vst.msk [vmem:[#allocation2 + $0x28] sm:$0xff] %vm45_vm0, %v595_v36 }
 0x2db   :  { %vm588_vm12 = vcmp.ge.f32.partialorder %v584_v37, 0.0  ;;  %v592_v38 = vmul.f32 0.01, %v584_v37 }
 0x2dd   :  { %v596_v39 = vsel %vm588_vm12, %v584_v37, %v592_v38  ;;  %v602_v40 = vld [vmem:[#allocation2 + $0xe] sm:$0xff]  ;;  %v603_v41 = vld [vmem:[#allocation2 + $0x16] sm:$0xff] }
 0x2de   :  { %600 = vst.msk [vmem:[#allocation2 + $0x30] sm:$0xff] %vm45_vm0, %v596_v39  ;;  %1672 = vmatmul.mubr.msk.f32.vlgmr.msra.gmra.mxu0 %vm45_vm0, %v602_v40 }
 0x2df   :  { %1674 = vmatprep.mubr.msk.f32.mxu0 %vm45_vm0, %v603_v41  ;;  %1698 = vmatpush3.msra.mxu0 %v1031_v54 }
 0x2e1   :  { %v604_v42 = vld [vmem:[#allocation2 + $0x26] sm:$0xff] }
 0x2e2   :  { %1675 = vmatmul.mubr.msk.f32.gmra.mxu0 %vm45_vm0, %v604_v42 }
 0x2e5   :  { %v605_v43 = vld [vmem:[#allocation2 + $0x2e] sm:$0xff]  ;;  %v606_v44 = vld [vmem:[#allocation2 + $0x36] sm:$0xff] }
 0x2e6   :  { %1677 = vmatprep.mubr.msk.f32.mxu0 %vm45_vm0, %v605_v43 }
 0x2e7   :  { %1678 = vmatmul.mubr.msk.f32.gmra.mxu0 %vm45_vm0, %v606_v44 }
 0x39e   :  { %v1673_v45 = vpop.f32.mrf.mxu0 }
 0x39f   :  { %v744_v47 = vrot.slane %v1673_v45, 2  ;;  %v770_v55 = vrot.slane %v1673_v45, 4  ;;  %v734_v17 = vadd.f32 %v1673_v45, %v1544_v11 }
 0x3a0   :  { %v696_v46 = vpop.f32.mrf.mxu0 }
 0x3a1   :  { %v743_v48 = vrot.slane %v696_v46, 2  ;;  %v769_v50 = vrot.slane %v696_v46, 4  ;;  %v733_v13 = vadd.f32 %v1544_v11, %v696_v46 }
 0x3a2   :  { %v1676_v49 = vpop.f32.mrf.mxu0 }
 0x3a3   :  { %v745_v51 = vsel %vm321_vm4, %v743_v48, %v744_v47  ;;  %v771_v59 = vsel %vm348_vm3, %v769_v50, %v770_v55  ;;  %v748_v63 = vrot.slane %v1676_v49, 2  ;;  %v774_v5 = vrot.slane %v1676_v49, 4 }
 0x3a4   :  { %753 = vrot.lane.b32.xlu0 %v745_v51, %s1803_s2  ;;  %v706_v53 = vpop.f32.mrf.mxu0  ;;  %v735_v22 = vadd.f32 %v1676_v49, %v1544_v11 }
 0x3a5   :  { %v746_v56 = vrot.slane %v706_v53, 2  ;;  %v772_v57 = vrot.slane %v706_v53, 4 }
 0x3a7   :  { %v1679_v58 = vpop.f32.mrf.mxu0  ;;  %v747_v60 = vsel %vm321_vm4, %v744_v47, %v746_v56  ;;  %v773_v3 = vsel %vm348_vm3, %v770_v55, %v772_v57  ;;  %v1030_v55 = vld [vmem:[#allocation7 + $0x90] sm:$0xff] }
 0x3a8   :  { %779 = vrot.lane.b32.xlu0 %v771_v59, %s1802_s1  ;;  %755 = vrot.lane.b32.xlu1 %v747_v60, %s1803_s2  ;;  %v751_v6 = vrot.slane %v1679_v58, 2  ;;  %v777_v9 = vrot.slane %v1679_v58, 4 }
 0x3a9   :  { %v716_v62 = vpop.f32.mrf.mxu0  ;;  %1699 = vmatprep.subr.mxu0 %v1030_v55 }
 0x3aa   :  { %v749_v0 = vrot.slane %v716_v62, 2  ;;  %v775_v2 = vrot.slane %v716_v62, 4  ;;  %v736_v29 = vadd.f32 %v1544_v11, %v716_v62  ;;  %v1029_v62 = vld [vmem:[#allocation7 + $0x88] sm:$0xff]  ;;  %1700 = vmatpush3.msra.mxu0 %v1030_v55  ;;  %v1241_v55 = vld [vmem:[#allocation7 + $0xb8] sm:$0xff] }
 0x3ab   :  { %1701 = vmatprep.subr.mxu0 %v1029_v62  ;;  %1714 = vmatprep.subr.mxu1 %v1241_v55 }
 0x3ac   :  { %781 = vrot.lane.b32.xlu1 %v773_v3, %s1802_s1  ;;  %v750_v4 = vsel %vm321_vm4, %v748_v63, %v749_v0  ;;  %v776_v7 = vsel %vm348_vm3, %v774_v5, %v775_v2  ;;  %v752_v8 = vsel %vm321_vm4, %v749_v0, %v751_v6  ;;  %v778_v10 = vsel %vm348_vm3, %v775_v2, %v777_v9  ;;  %v1028_v2 = vld [vmem:[#allocation7 + $0x80] sm:$0xff] }
 0x3ad   :  { %757 = vrot.lane.b32.xlu0 %v750_v4, %s1803_s2  ;;  %1702 = vmatpush3.msra.mxu0 %v1029_v62 }
 0x3ae   :  { %1703 = vmatprep.subr.mxu0 %v1028_v2 }
 0x3af   :  { %1704 = vmatpush3.msra.mxu0 %v1028_v2 }
 0x3b0   :  { %783 = vrot.lane.b32.xlu1 %v776_v7, %s1802_s1 }
 0x3b1   :  { %759 = vrot.lane.b32.xlu0 %v752_v8, %s1803_s2 }
 0x3b4   :  { %785 = vrot.lane.b32.xlu1 %v778_v10, %s1802_s1 }
 0x416   :  { %v754_v12 = vpop.permute.xlu0 %753 }
 0x417   :  { %v765_v14 = vadd.f32 %v754_v12, %v733_v13  ;;  %v1552_v12 = vld [vmem:[%s2164_s3 + $0x3] ss:$0 sm:$0xff] }
 0x41a   :  { %v756_v15 = vpop.permute.xlu1 %755  ;;  %v780_v16 = vpop.permute.xlu0 %779 }
 0x41b   :  { %v791_v18 = vadd.f32 %v780_v16, %v765_v14  ;;  %v766_v19 = vadd.f32 %v756_v15, %v734_v17 }
 0x41d   :  { %vm795_vm13 = vcmp.ge.f32.partialorder %v791_v18, 0.0  ;;  %v799_v20 = vmul.f32 0.01, %v791_v18 }
 0x41e   :  { %v782_v21 = vpop.permute.xlu1 %781 }
 0x41f   :  { %v803_v23 = vsel %vm795_vm13, %v791_v18, %v799_v20  ;;  %v792_v24 = vadd.f32 %v782_v21, %v766_v19  ;;  %v758_v25 = vpop.permute.xlu0 %757 }
 0x420   :  { %807 = vst.msk [vmem:[#allocation2 + $0x8] sm:$0xff] %vm45_vm0, %v803_v23  ;;  %v767_v26 = vadd.f32 %v758_v25, %v735_v22 }
 0x421   :  { %vm796_vm14 = vcmp.ge.f32.partialorder %v792_v24, 0.0  ;;  %v800_v27 = vmul.f32 0.01, %v792_v24 }
 0x422   :  { %v784_v28 = vpop.permute.xlu1 %783 }
 0x423   :  { %v804_v30 = vsel %vm796_vm14, %v792_v24, %v800_v27  ;;  %v793_v31 = vadd.f32 %v784_v28, %v767_v26  ;;  %v760_v32 = vpop.permute.xlu0 %759 }
 0x424   :  { %808 = vst.msk [vmem:[#allocation2 + $0x10] sm:$0xff] %vm45_vm0, %v804_v30  ;;  %v768_v33 = vadd.f32 %v760_v32, %v736_v29 }
 0x425   :  { %vm797_vm15 = vcmp.ge.f32.partialorder %v793_v31, 0.0  ;;  %v801_v34 = vmul.f32 0.01, %v793_v31 }
 0x426   :  { %v786_v35 = vpop.permute.xlu1 %785 }
 0x427   :  { %v805_v36 = vsel %vm797_vm15, %v793_v31, %v801_v34  ;;  %v794_v37 = vadd.f32 %v786_v35, %v768_v33  ;;  %v811_v38 = vld [vmem:[#allocation2 + $0x6] sm:$0xff] }
 0x428   :  { %809 = vst.msk [vmem:[#allocation2 + $0x28] sm:$0xff] %vm45_vm0, %v805_v36  ;;  %1688 = vmatprep.mubr.msk.f32.mxu1 %vm45_vm0, %v811_v38 }
 0x429   :  { %vm798_vm1 = vcmp.ge.f32.partialorder %v794_v37, 0.0  ;;  %v802_v39 = vmul.f32 0.01, %v794_v37 }
 0x42b   :  { %v806_v40 = vsel %vm798_vm1, %v794_v37, %v802_v39  ;;  %v812_v41 = vld [vmem:[#allocation2 + $0xe] sm:$0xff]  ;;  %v813_v42 = vld [vmem:[#allocation2 + $0x16] sm:$0xff] }
 0x42c   :  { %810 = vst.msk [vmem:[#allocation2 + $0x30] sm:$0xff] %vm45_vm0, %v806_v40  ;;  %1689 = vmatmul.mubr.msk.f32.vlgmr.msra.gmra.mxu1 %vm45_vm0, %v812_v41 }
 0x42d   :  { %1691 = vmatprep.mubr.msk.f32.mxu1 %vm45_vm0, %v813_v42  ;;  %1715 = vmatpush3.msra.mxu1 %v1241_v55 }
 0x42f   :  { %v814_v43 = vld [vmem:[#allocation2 + $0x26] sm:$0xff] }
 0x430   :  { %1692 = vmatmul.mubr.msk.f32.gmra.mxu1 %vm45_vm0, %v814_v43 }
 0x433   :  { %v815_v44 = vld [vmem:[#allocation2 + $0x2e] sm:$0xff]  ;;  %v816_v45 = vld [vmem:[#allocation2 + $0x36] sm:$0xff] }
 0x434   :  { %1694 = vmatprep.mubr.msk.f32.mxu1 %vm45_vm0, %v815_v44 }
 0x435   :  { %1695 = vmatmul.mubr.msk.f32.gmra.mxu1 %vm45_vm0, %v816_v45 }
 0x4ec   :  { %v1690_v46 = vpop.f32.mrf.mxu1 }
 0x4ed   :  { %v954_v48 = vrot.slane %v1690_v46, 2  ;;  %v980_v56 = vrot.slane %v1690_v46, 4  ;;  %v944_v18 = vadd.f32 %v1690_v46, %v1552_v12 }
 0x4ee   :  { %v906_v47 = vpop.f32.mrf.mxu1 }
 0x4ef   :  { %v953_v49 = vrot.slane %v906_v47, 2  ;;  %v979_v51 = vrot.slane %v906_v47, 4  ;;  %v943_v14 = vadd.f32 %v1552_v12, %v906_v47 }
 0x4f0   :  { %v1693_v50 = vpop.f32.mrf.mxu1 }
 0x4f1   :  { %v955_v52 = vsel %vm321_vm4, %v953_v49, %v954_v48  ;;  %v981_v60 = vsel %vm348_vm3, %v979_v51, %v980_v56  ;;  %v958_v0 = vrot.slane %v1693_v50, 2  ;;  %v984_v6 = vrot.slane %v1693_v50, 4 }
 0x4f2   :  { %963 = vrot.lane.b32.xlu0 %v955_v52, %s1803_s2  ;;  %v916_v53 = vpop.f32.mrf.mxu1  ;;  %v945_v23 = vadd.f32 %v1693_v50, %v1552_v12 }
 0x4f3   :  { %v956_v57 = vrot.slane %v916_v53, 2  ;;  %v982_v58 = vrot.slane %v916_v53, 4 }
 0x4f5   :  { %v1696_v59 = vpop.f32.mrf.mxu1  ;;  %v957_v61 = vsel %vm321_vm4, %v954_v48, %v956_v57  ;;  %v983_v4 = vsel %vm348_vm3, %v980_v56, %v982_v58  ;;  %v1240_v56 = vld [vmem:[#allocation7 + $0xb0] sm:$0xff] }
 0x4f6   :  { %989 = vrot.lane.b32.xlu0 %v981_v60, %s1802_s1  ;;  %965 = vrot.lane.b32.xlu1 %v957_v61, %s1803_s2  ;;  %v961_v7 = vrot.slane %v1696_v59, 2  ;;  %v987_v10 = vrot.slane %v1696_v59, 4 }
 0x4f7   :  { %v926_v63 = vpop.f32.mrf.mxu1  ;;  %1716 = vmatprep.subr.mxu1 %v1240_v56 }
 0x4f8   :  { %v959_v1 = vrot.slane %v926_v63, 2  ;;  %v985_v3 = vrot.slane %v926_v63, 4  ;;  %v946_v30 = vadd.f32 %v1552_v12, %v926_v63  ;;  %v1239_v63 = vld [vmem:[#allocation7 + $0xa8] sm:$0xff]  ;;  %1717 = vmatpush3.msra.mxu1 %v1240_v56 }
 0x4f9   :  { %1718 = vmatprep.subr.mxu1 %v1239_v63 }
 0x4fa   :  { %991 = vrot.lane.b32.xlu1 %v983_v4, %s1802_s1  ;;  %v960_v5 = vsel %vm321_vm4, %v958_v0, %v959_v1  ;;  %v986_v8 = vsel %vm348_vm3, %v984_v6, %v985_v3  ;;  %v962_v9 = vsel %vm321_vm4, %v959_v1, %v961_v7  ;;  %v988_v11 = vsel %vm348_vm3, %v985_v3, %v987_v10  ;;  %v1238_v3 = vld [vmem:[#allocation7 + $0xa0] sm:$0xff] }
 0x4fb   :  { %967 = vrot.lane.b32.xlu0 %v960_v5, %s1803_s2  ;;  %1719 = vmatpush3.msra.mxu1 %v1239_v63 }
 0x4fc   :  { %1720 = vmatprep.subr.mxu1 %v1238_v3 }
 0x4fd   :  { %1721 = vmatpush3.msra.mxu1 %v1238_v3 }
 0x4fe   :  { %993 = vrot.lane.b32.xlu1 %v986_v8, %s1802_s1 }
 0x4ff   :  { %969 = vrot.lane.b32.xlu0 %v962_v9, %s1803_s2 }
 0x502   :  { %995 = vrot.lane.b32.xlu1 %v988_v11, %s1802_s1 }
 0x564   :  { %v964_v13 = vpop.permute.xlu0 %963 }
 0x565   :  { %v975_v15 = vadd.f32 %v964_v13, %v943_v14  ;;  %v1560_v13 = vld [vmem:[%s2164_s3 + $0x4] ss:$0 sm:$0xff] }
 0x568   :  { %v966_v16 = vpop.permute.xlu1 %965  ;;  %v990_v17 = vpop.permute.xlu0 %989 }
 0x569   :  { %v1001_v19 = vadd.f32 %v990_v17, %v975_v15  ;;  %v976_v20 = vadd.f32 %v966_v16, %v944_v18 }
 0x56b   :  { %vm1005_vm2 = vcmp.ge.f32.partialorder %v1001_v19, 0.0  ;;  %v1009_v21 = vmul.f32 0.01, %v1001_v19 }
 0x56c   :  { %v992_v22 = vpop.permute.xlu1 %991 }
 0x56d   :  { %v1013_v24 = vsel %vm1005_vm2, %v1001_v19, %v1009_v21  ;;  %v1002_v25 = vadd.f32 %v992_v22, %v976_v20  ;;  %v968_v26 = vpop.permute.xlu0 %967 }
 0x56e   :  { %1017 = vst.msk [vmem:[#allocation2 + $0x8] sm:$0xff] %vm45_vm0, %v1013_v24  ;;  %v977_v27 = vadd.f32 %v968_v26, %v945_v23 }
 0x56f   :  { %vm1006_vm5 = vcmp.ge.f32.partialorder %v1002_v25, 0.0  ;;  %v1010_v28 = vmul.f32 0.01, %v1002_v25 }
 0x570   :  { %v994_v29 = vpop.permute.xlu1 %993 }
 0x571   :  { %v1014_v31 = vsel %vm1006_vm5, %v1002_v25, %v1010_v28  ;;  %v1003_v32 = vadd.f32 %v994_v29, %v977_v27  ;;  %v970_v33 = vpop.permute.xlu0 %969 }
 0x572   :  { %1018 = vst.msk [vmem:[#allocation2 + $0x10] sm:$0xff] %vm45_vm0, %v1014_v31  ;;  %v978_v34 = vadd.f32 %v970_v33, %v946_v30 }
 0x573   :  { %vm1007_vm6 = vcmp.ge.f32.partialorder %v1003_v32, 0.0  ;;  %v1011_v35 = vmul.f32 0.01, %v1003_v32 }
 0x574   :  { %v996_v36 = vpop.permute.xlu1 %995 }
 0x575   :  { %v1015_v37 = vsel %vm1007_vm6, %v1003_v32, %v1011_v35  ;;  %v1004_v38 = vadd.f32 %v996_v36, %v978_v34  ;;  %v1021_v39 = vld [vmem:[#allocation2 + $0x6] sm:$0xff] }
 0x576   :  { %1019 = vst.msk [vmem:[#allocation2 + $0x28] sm:$0xff] %vm45_vm0, %v1015_v37  ;;  %1705 = vmatprep.mubr.msk.f32.mxu0 %vm45_vm0, %v1021_v39 }
 0x577   :  { %vm1008_vm7 = vcmp.ge.f32.partialorder %v1004_v38, 0.0  ;;  %v1012_v40 = vmul.f32 0.01, %v1004_v38 }
 0x579   :  { %v1016_v41 = vsel %vm1008_vm7, %v1004_v38, %v1012_v40  ;;  %v1022_v42 = vld [vmem:[#allocation2 + $0xe] sm:$0xff]  ;;  %v1023_v43 = vld [vmem:[#allocation2 + $0x16] sm:$0xff] }
 0x57a   :  { %1020 = vst.msk [vmem:[#allocation2 + $0x30] sm:$0xff] %vm45_vm0, %v1016_v41  ;;  %1706 = vmatmul.mubr.msk.f32.vlgmr.msra.gmra.mxu0 %vm45_vm0, %v1022_v42 }
 0x57b   :  { %1708 = vmatprep.mubr.msk.f32.mxu0 %vm45_vm0, %v1023_v43 }
 0x57d   :  { %v1024_v44 = vld [vmem:[#allocation2 + $0x26] sm:$0xff] }
 0x57e   :  { %1709 = vmatmul.mubr.msk.f32.gmra.mxu0 %vm45_vm0, %v1024_v44 }
 0x581   :  { %v1025_v45 = vld [vmem:[#allocation2 + $0x2e] sm:$0xff]  ;;  %v1026_v46 = vld [vmem:[#allocation2 + $0x36] sm:$0xff] }
 0x582   :  { %1711 = vmatprep.mubr.msk.f32.mxu0 %vm45_vm0, %v1025_v45 }
 0x583   :  { %1712 = vmatmul.mubr.msk.f32.gmra.mxu0 %vm45_vm0, %v1026_v46 }
 0x63a   :  { %v1707_v47 = vpop.f32.mrf.mxu0 }
 0x63b   :  { %v1164_v49 = vrot.slane %v1707_v47, 2  ;;  %v1190_v57 = vrot.slane %v1707_v47, 4  ;;  %v1154_v19 = vadd.f32 %v1707_v47, %v1560_v13 }
 0x63c   :  { %v1116_v48 = vpop.f32.mrf.mxu0 }
 0x63d   :  { %v1163_v50 = vrot.slane %v1116_v48, 2  ;;  %v1189_v52 = vrot.slane %v1116_v48, 4  ;;  %v1153_v15 = vadd.f32 %v1560_v13, %v1116_v48 }
 0x63e   :  { %v1710_v51 = vpop.f32.mrf.mxu0 }
 0x63f   :  { %v1165_v53 = vsel %vm321_vm4, %v1163_v50, %v1164_v49  ;;  %v1191_v61 = vsel %vm348_vm3, %v1189_v52, %v1190_v57  ;;  %v1168_v1 = vrot.slane %v1710_v51, 2  ;;  %v1194_v7 = vrot.slane %v1710_v51, 4 }
 0x640   :  { %1173 = vrot.lane.b32.xlu0 %v1165_v53, %s1803_s2  ;;  %v1126_v54 = vpop.f32.mrf.mxu0  ;;  %v1155_v24 = vadd.f32 %v1710_v51, %v1560_v13 }
 0x641   :  { %v1166_v58 = vrot.slane %v1126_v54, 2  ;;  %v1192_v59 = vrot.slane %v1126_v54, 4 }
 0x643   :  { %v1713_v60 = vpop.f32.mrf.mxu0  ;;  %v1167_v62 = vsel %vm321_vm4, %v1164_v49, %v1166_v58  ;;  %v1193_v5 = vsel %vm348_vm3, %v1190_v57, %v1192_v59 }
 0x644   :  { %1199 = vrot.lane.b32.xlu0 %v1191_v61, %s1802_s1  ;;  %1175 = vrot.lane.b32.xlu1 %v1167_v62, %s1803_s2  ;;  %v1171_v8 = vrot.slane %v1713_v60, 2  ;;  %v1197_v11 = vrot.slane %v1713_v60, 4 }
 0x645   :  { %v1136_v0 = vpop.f32.mrf.mxu0 }
 0x646   :  { %v1169_v2 = vrot.slane %v1136_v0, 2  ;;  %v1195_v4 = vrot.slane %v1136_v0, 4  ;;  %v1156_v30 = vadd.f32 %v1560_v13, %v1136_v0 }
 0x648   :  { %1201 = vrot.lane.b32.xlu1 %v1193_v5, %s1802_s1  ;;  %v1170_v6 = vsel %vm321_vm4, %v1168_v1, %v1169_v2  ;;  %v1196_v9 = vsel %vm348_vm3, %v1194_v7, %v1195_v4  ;;  %v1172_v10 = vsel %vm321_vm4, %v1169_v2, %v1171_v8  ;;  %v1198_v12 = vsel %vm348_vm3, %v1195_v4, %v1197_v11 }
 0x649   :  { %1177 = vrot.lane.b32.xlu0 %v1170_v6, %s1803_s2 }
 0x64c   :  { %1203 = vrot.lane.b32.xlu1 %v1196_v9, %s1802_s1 }
 0x64d   :  { %1179 = vrot.lane.b32.xlu0 %v1172_v10, %s1803_s2  ;;  %v1568_v10 = vld [vmem:[%s2164_s3 + $0x5] ss:$0 sm:$0xff]  ;;  %s1804_s3 = smov [#allocation8]  }
 0x64e   :  { %s1446_s18 = sshll.u32 %s1804_s3, 4  ;;  %s1447_s18 = int_to_ptr.vmem [resolvable:$true] %s1446_s18 }
 0x64f   :  { %s1771_s30 = scalar_lea.vmem %s1447_s18, 512  ;;  %p1776_p11 = scmp.lt.s32.totalorder %s1447_s18, %s1447_s18 }
 0x650   :  { %1205 = vrot.lane.b32.xlu1 %v1198_v12, %s1802_s1  ;;  %p1772_p10 = scmp.ne.s32.totalorder %s1447_s18, %s1771_s30  ;;  %p1777_p12 = scmp.lt.s32.totalorder %s1771_s30, %s1771_s30 }
 0x652   :  { %p1778_p13 = por %p1777_p12, %p1776_p11 }
 0x654   :  { %p1779_p0 = pnand %p1778_p13, %p1772_p10 }
 0x6b2   :  { %v1174_v14 = vpop.permute.xlu0 %1173 }
 0x6b3   :  { %v1185_v16 = vadd.f32 %v1174_v14, %v1153_v15 }
 0x6b6   :  { %v1176_v17 = vpop.permute.xlu1 %1175  ;;  %v1200_v18 = vpop.permute.xlu0 %1199 }
 0x6b7   :  { %v1211_v20 = vadd.f32 %v1200_v18, %v1185_v16  ;;  %v1186_v21 = vadd.f32 %v1176_v17, %v1154_v19 }
 0x6b9   :  { %vm1215_vm8 = vcmp.ge.f32.partialorder %v1211_v20, 0.0  ;;  %v1219_v22 = vmul.f32 0.01, %v1211_v20 }
 0x6ba   :  { %v1202_v23 = vpop.permute.xlu1 %1201 }
 0x6bb   :  { %v1223_v25 = vsel %vm1215_vm8, %v1211_v20, %v1219_v22  ;;  %v1212_v26 = vadd.f32 %v1202_v23, %v1186_v21  ;;  %v1178_v27 = vpop.permute.xlu0 %1177 }
 0x6bc   :  { %1227 = vst.msk [vmem:[#allocation2 + $0x8] sm:$0xff] %vm45_vm0, %v1223_v25  ;;  %v1187_v28 = vadd.f32 %v1178_v27, %v1155_v24 }
 0x6bd   :  { %vm1216_vm9 = vcmp.ge.f32.partialorder %v1212_v26, 0.0  ;;  %v1220_v29 = vmul.f32 0.01, %v1212_v26 }
 0x6be   :  { %v1204_v31 = vpop.permute.xlu1 %1203 }
 0x6bf   :  { %v1224_v32 = vsel %vm1216_vm9, %v1212_v26, %v1220_v29  ;;  %v1213_v33 = vadd.f32 %v1204_v31, %v1187_v28  ;;  %v1180_v34 = vpop.permute.xlu0 %1179 }
 0x6c0   :  { %1228 = vst.msk [vmem:[#allocation2 + $0x10] sm:$0xff] %vm45_vm0, %v1224_v32  ;;  %v1188_v35 = vadd.f32 %v1180_v34, %v1156_v30 }
 0x6c1   :  { %vm1217_vm10 = vcmp.ge.f32.partialorder %v1213_v33, 0.0  ;;  %v1221_v36 = vmul.f32 0.01, %v1213_v33 }
 0x6c2   :  { %v1206_v37 = vpop.permute.xlu1 %1205 }
 0x6c3   :  { %v1225_v38 = vsel %vm1217_vm10, %v1213_v33, %v1221_v36  ;;  %v1214_v39 = vadd.f32 %v1206_v37, %v1188_v35  ;;  %v1231_v40 = vld [vmem:[#allocation2 + $0x6] sm:$0xff] }
 0x6c4   :  { %1229 = vst.msk [vmem:[#allocation2 + $0x28] sm:$0xff] %vm45_vm0, %v1225_v38  ;;  %1722 = vmatprep.mubr.msk.f32.mxu1 %vm45_vm0, %v1231_v40 }
 0x6c5   :  { %vm1218_vm11 = vcmp.ge.f32.partialorder %v1214_v39, 0.0  ;;  %v1222_v41 = vmul.f32 0.01, %v1214_v39 }
 0x6c7   :  { %v1226_v42 = vsel %vm1218_vm11, %v1214_v39, %v1222_v41  ;;  %v1232_v43 = vld [vmem:[#allocation2 + $0xe] sm:$0xff]  ;;  %v1233_v44 = vld [vmem:[#allocation2 + $0x16] sm:$0xff] }
 0x6c8   :  { %1230 = vst.msk [vmem:[#allocation2 + $0x30] sm:$0xff] %vm45_vm0, %v1226_v42  ;;  %1723 = vmatmul.mubr.msk.f32.vlgmr.msra.gmra.mxu1 %vm45_vm0, %v1232_v43 }
 0x6c9   :  { %1725 = vmatprep.mubr.msk.f32.mxu1 %vm45_vm0, %v1233_v44 }
 0x6cb   :  { %v1234_v45 = vld [vmem:[#allocation2 + $0x26] sm:$0xff] }
 0x6cc   :  { %1726 = vmatmul.mubr.msk.f32.gmra.mxu1 %vm45_vm0, %v1234_v45 }
 0x6cf   :  { %v1235_v46 = vld [vmem:[#allocation2 + $0x2e] sm:$0xff]  ;;  %v1236_v47 = vld [vmem:[#allocation2 + $0x36] sm:$0xff] }
 0x6d0   :  { %1728 = vmatprep.mubr.msk.f32.mxu1 %vm45_vm0, %v1235_v46 }
 0x6d1   :  { %1729 = vmatmul.mubr.msk.f32.gmra.mxu1 %vm45_vm0, %v1236_v47 }
 0x788   :  { %v1724_v48 = vpop.f32.mrf.mxu1 }
 0x789   :  { %v1374_v50 = vrot.slane %v1724_v48, 2  ;;  %v1400_v56 = vrot.slane %v1724_v48, 4  ;;  %v1364_v16 = vadd.f32 %v1724_v48, %v1568_v10 }
 0x78a   :  { %v1326_v49 = vpop.f32.mrf.mxu1 }
 0x78b   :  { %v1373_v51 = vrot.slane %v1326_v49, 2  ;;  %v1399_v53 = vrot.slane %v1326_v49, 4  ;;  %v1363_v12 = vadd.f32 %v1568_v10, %v1326_v49 }
 0x78c   :  { %v1727_v52 = vpop.f32.mrf.mxu1 }
 0x78d   :  { %v1375_v54 = vsel %vm321_vm4, %v1373_v51, %v1374_v50  ;;  %v1401_v60 = vsel %vm348_vm3, %v1399_v53, %v1400_v56  ;;  %v1378_v63 = vrot.slane %v1727_v52, 2  ;;  %v1404_v5 = vrot.slane %v1727_v52, 4 }
 0x78e   :  { %1383 = vrot.lane.b32.xlu0 %v1375_v54, %s1803_s2  ;;  %v1336_v55 = vpop.f32.mrf.mxu1  ;;  %v1365_v24 = vadd.f32 %v1727_v52, %v1568_v10 }
 0x78f   :  { %v1376_v57 = vrot.slane %v1336_v55, 2  ;;  %v1402_v58 = vrot.slane %v1336_v55, 4 }
 0x791   :  { %v1730_v59 = vpop.f32.mrf.mxu1  ;;  %v1377_v61 = vsel %vm321_vm4, %v1374_v50, %v1376_v57  ;;  %v1403_v1 = vsel %vm348_vm3, %v1400_v56, %v1402_v58 }
 0x792   :  { %1409 = vrot.lane.b32.xlu0 %v1401_v60, %s1802_s1  ;;  %1385 = vrot.lane.b32.xlu1 %v1377_v61, %s1803_s2  ;;  %v1381_v4 = vrot.slane %v1730_v59, 2  ;;  %v1407_v8 = vrot.slane %v1730_v59, 4 }
 0x793   :  { %v1346_v62 = vpop.f32.mrf.mxu1 }
 0x794   :  { %v1379_v0 = vrot.slane %v1346_v62, 2  ;;  %v1405_v2 = vrot.slane %v1346_v62, 4  ;;  %v1366_v28 = vadd.f32 %v1568_v10, %v1346_v62 }
 0x796   :  { %1411 = vrot.lane.b32.xlu1 %v1403_v1, %s1802_s1  ;;  %v1380_v3 = vsel %vm321_vm4, %v1378_v63, %v1379_v0  ;;  %v1382_v6 = vsel %vm321_vm4, %v1379_v0, %v1381_v4  ;;  %v1406_v7 = vsel %vm348_vm3, %v1404_v5, %v1405_v2  ;;  %v1408_v9 = vsel %vm348_vm3, %v1405_v2, %v1407_v8 }
 0x797   :  { %1387 = vrot.lane.b32.xlu0 %v1380_v3, %s1803_s2 }
 0x79a   :  { %1389 = vrot.lane.b32.xlu1 %v1382_v6, %s1803_s2 }
 0x79b   :  { %1413 = vrot.lane.b32.xlu0 %v1406_v7, %s1802_s1 }
 0x79e   :  { %1415 = vrot.lane.b32.xlu1 %v1408_v9, %s1802_s1 }
 0x800   :  { %v1384_v11 = vpop.permute.xlu0 %1383 }
 0x801   :  { %v1395_v13 = vadd.f32 %v1384_v11, %v1363_v12 }
 0x804   :  { %v1386_v14 = vpop.permute.xlu1 %1385  ;;  %v1410_v15 = vpop.permute.xlu0 %1409 }
 0x805   :  { %v1421_v17 = vadd.f32 %v1410_v15, %v1395_v13  ;;  %v1396_v18 = vadd.f32 %v1386_v14, %v1364_v16 }
 0x807   :  { %vm1425_vm4 = vcmp.ge.f32.partialorder %v1421_v17, 0.0  ;;  %v1429_v19 = vmul.f32 0.01, %v1421_v17 }
 0x808   :  { %v1412_v20 = vpop.permute.xlu1 %1411 }
 0x809   :  { %v1433_v21 = vsel %vm1425_vm4, %v1421_v17, %v1429_v19  ;;  %v1422_v22 = vadd.f32 %v1412_v20, %v1396_v18  ;;  %v1388_v23 = vpop.permute.xlu0 %1387 }
 0x80a   :  { %1437 = vst.msk [vmem:[#allocation8] sm:$0xff] %vm45_vm0, %v1433_v21  ;;  %v1397_v26 = vadd.f32 %v1388_v23, %v1365_v24 }
 0x80b   :  { %vm1426_vm3 = vcmp.ge.f32.partialorder %v1422_v22, 0.0  ;;  %v1430_v25 = vmul.f32 0.01, %v1422_v22 }
 0x80c   :  { %v1390_v27 = vpop.permute.xlu1 %1389 }
 0x80d   :  { %v1434_v29 = vsel %vm1426_vm3, %v1422_v22, %v1430_v25  ;;  %v1414_v30 = vpop.permute.xlu0 %1413  ;;  %v1398_v32 = vadd.f32 %v1390_v27, %v1366_v28 }
 0x80e   :  { %1438 = vst.msk [vmem:[#allocation8 + $0x8] sm:$0xff] %vm45_vm0, %v1434_v29  ;;  %v1423_v31 = vadd.f32 %v1414_v30, %v1397_v26 }
 0x810   :  { %vm1427_vm12 = vcmp.ge.f32.partialorder %v1423_v31, 0.0  ;;  %v1431_v33 = vmul.f32 0.01, %v1423_v31  ;;  %v1416_v34 = vpop.permute.xlu1 %1415 }
 0x811   :  { %v1424_v35 = vadd.f32 %v1416_v34, %v1398_v32 }
 0x812   :  { %v1435_v36 = vsel %vm1427_vm12, %v1423_v31, %v1431_v33 }
 0x813   :  { %1439 = vst.msk [vmem:[#allocation8 + $0x10] sm:$0xff] %vm45_vm0, %v1435_v36  ;;  %vm1428_vm13 = vcmp.ge.f32.partialorder %v1424_v35, 0.0  ;;  %v1432_v37 = vmul.f32 0.01, %v1424_v35 }
 0x815   :  { %v1436_v38 = vsel %vm1428_vm13, %v1424_v35, %v1432_v37 }
 0x816   :  { %1440 = vst.msk [vmem:[#allocation8 + $0x18] sm:$0xff] %vm45_vm0, %v1436_v38 }
 0x817   :  { %1782 = shalt.err (!%p1779_p0)
}
 0x818   :  { %1452 = dma.vmem_to_hbm [thread:$0]  %s1447_s18, 512, %s2165_s4, [#allocation5], %s1799_s0, %s1799_s0, %s1800_s23  }
 0x819   :  { %1795 = dma.done.wait [#allocation5], 512  }
 0x81a   :  { %1796 = vsyncadd [#allocation5], 4294966784 }
 0x81b   :  { %1456 = vsyncpa [#allocation4], 1 }
 0x81c   :  { %1457 = vsyncpa [#allocation5], 1 }
 0x81d   :  { %1458 = vsyncpa [#allocation6], 1 }

</bundles_post_ra>
